<compile_context>
chip_gen: v6e
topology: v6e:2x2x1
jax: 0.10.0
libtpu: 0.0.40
codegen_flags: <defaults>
</compile_context>

<pallas_src>
import math
from functools import partial

import jax
import jax.numpy as jnp
import numpy as np
from jax.experimental import pallas as pl
from jax.experimental.pallas import tpu as pltpu

NUM_CLASSES = 3
CLASS_PAD = 128          # lane-dense head output (class dim padded 3 -> 128)
OUT_SUBLANES = 8         # output block padded to a full (8, 128) f32 tile
NEG_INF = -1e30
HI = jax.lax.Precision.HIGHEST


# ----------------------------- fused Pallas kernel ---------------------------

def fused_transformer_kernel(nhead,
                             x_ref, pe_ref, vec_ref, w_in_ref, w_out_ref,
                             wqkv_ref, wo_ref, w1_ref, w2_ref,
                             o_ref, ctx_ref):
    """One sequence per grid step: embed -> L x encoder layer -> fc_out+softmax.

    All weights are VMEM-resident (constant block index across the grid);
    layers and heads are statically unrolled; matmuls are bf16 x bf16 -> f32.
    """
    f32, bf16 = jnp.float32, jnp.bfloat16
    D = w_in_ref.shape[1]
    num_layers = wqkv_ref.shape[0]
    hd = D // nhead
    scale = 1.0 / math.sqrt(hd)

    # rows 0/1 of the packed vector slab are the global biases
    b_in = vec_ref[0:1, :D]                       # (1, D)
    b_out = vec_ref[1:2, :CLASS_PAD]              # (1, 128), pads carry -1e30

    # --- input_fc + positional encoding (dropout = identity in eval) --------
    x = x_ref[0].astype(bf16)                                        # (S, in_dim)
    h = jnp.dot(x, w_in_ref[...], preferred_element_type=f32)
    h = h + b_in + pe_ref[...]                                       # (S, D) f32

    # --- statically unrolled encoder layers (post-norm, ReLU FFN) -----------
    for l in range(num_layers):
        base = 2 + 8 * l
        bqkv = vec_ref[base + 0:base + 1, :3 * D]
        bo   = vec_ref[base + 1:base + 2, :D]
        b1   = vec_ref[base + 2:base + 3, :4 * D]
        b2   = vec_ref[base + 3:base + 4, :D]
        ln1w = vec_ref[base + 4:base + 5, :D]
        ln1b = vec_ref[base + 5:base + 6, :D]
        ln2w = vec_ref[base + 6:base + 7, :D]
        ln2b = vec_ref[base + 7:base + 8, :D]

        # fused QKV projection for the whole sequence
        qkv = jnp.dot(h.astype(bf16), wqkv_ref[l],
                      preferred_element_type=f32) + bqkv             # (S, 3D)

        # per-head attention: 2-D lane slices only, no 3-D reshapes/einsums
        for hh in range(nhead):
            lo = hh * hd
            q_h  = (qkv[:, lo:lo + hd] * scale).astype(bf16)          # (S, hd)
            k_ht = qkv[:, D + lo:D + lo + hd].T.astype(bf16)          # (hd, S)
            v_h  = qkv[:, 2 * D + lo:2 * D + lo + hd].astype(bf16)    # (S, hd)

            s = jnp.dot(q_h, k_ht, preferred_element_type=f32)        # (S, S)
            s = s - jnp.max(s, axis=-1, keepdims=True)
            e = jnp.exp(s)
            # exact reciprocal: cheap at this size, avoids compounding approx
            # error across layers (review correctness concern).
            p = e * pl.reciprocal(jnp.sum(e, axis=-1, keepdims=True),
                                  approx=False)
            ctx_ref[:, lo:lo + hd] = jnp.dot(p.astype(bf16), v_h,
                                             preferred_element_type=f32)

        attn = jnp.dot(ctx_ref[...].astype(bf16), wo_ref[l],
                       preferred_element_type=f32) + bo

        # residual + LayerNorm 1
        y = h + attn
        mu = jnp.mean(y, axis=-1, keepdims=True)
        var = jnp.mean((y - mu) ** 2, axis=-1, keepdims=True)
        y = (y - mu) * jax.lax.rsqrt(var + 1e-5) * ln1w + ln1b

        # feed-forward (ReLU)
        f = jnp.dot(y.astype(bf16), w1_ref[l], preferred_element_type=f32) + b1
        f = jnp.maximum(f, 0.0)
        f = jnp.dot(f.astype(bf16), w2_ref[l], preferred_element_type=f32) + b2

        # residual + LayerNorm 2
        z = y + f
        mu2 = jnp.mean(z, axis=-1, keepdims=True)
        var2 = jnp.mean((z - mu2) ** 2, axis=-1, keepdims=True)
        h = (z - mu2) * jax.lax.rsqrt(var2 + 1e-5) * ln2w + ln2b

    # --- head: fc_out on token 0 of this sequence + softmax -----------------
    x0 = h[0:1, :].astype(bf16)                                       # (1, D)
    logits = jnp.dot(x0, w_out_ref[...],
                     preferred_element_type=f32) + b_out              # (1, 128)
    m = jnp.max(logits, axis=-1, keepdims=True)
    eh = jnp.exp(logits - m)          # padded lanes: exp(-1e30 - m) == 0 exactly
    probs = eh * pl.reciprocal(jnp.sum(eh, axis=-1, keepdims=True), approx=False)
    o_ref[0] = jnp.broadcast_to(probs, (OUT_SUBLANES, CLASS_PAD))


# ----------------------------- wrapper ---------------------------------------

@partial(jax.jit, static_argnums=(2,))
def transformer_forward(x, W, nhead):
    """x: (B, S, input_dim) f32; W: packed parameters (see pack_params)."""
    B, S, in_dim = x.shape
    D = W["w_in"].shape[1]
    L = W["wqkv"].shape[0]

    in_specs = [
        pl.BlockSpec((1, S, in_dim), lambda b: (b, 0, 0)),      # x: one sequence
        pl.BlockSpec(W["pe"].shape, lambda b: (0, 0)),          # pe (S, D)
        pl.BlockSpec(W["vec"].shape, lambda b: (0, 0)),         # packed bias slab
        pl.BlockSpec(W["w_in"].shape, lambda b: (0, 0)),
        pl.BlockSpec(W["w_out"].shape, lambda b: (0, 0)),
        pl.BlockSpec(W["wqkv"].shape, lambda b: (0, 0, 0)),     # (L, D, 3D)
        pl.BlockSpec(W["wo"].shape, lambda b: (0, 0, 0)),       # (L, D, D)
        pl.BlockSpec(W["w1"].shape, lambda b: (0, 0, 0)),       # (L, D, 4D)
        pl.BlockSpec(W["w2"].shape, lambda b: (0, 0, 0)),       # (L, 4D, D)
    ]
    out_spec = pl.BlockSpec((1, OUT_SUBLANES, CLASS_PAD), lambda b: (b, 0, 0))

    # advisory cost estimate for XLA's scheduler
    flops = B * (2 * S * in_dim * D
                 + L * (2 * S * D * 3 * D          # qkv projection
                        + 4 * S * S * D            # scores + p@V over all heads
                        + 2 * S * D * D            # out projection
                        + 4 * S * D * 4 * D)       # FFN (two matmuls)
                 + 2 * D * CLASS_PAD)
    transcendentals = B * (L * nhead * S * S + CLASS_PAD)
    bytes_accessed = int(sum(int(np.prod(a.shape)) * a.dtype.itemsize for a in
                             (x, W["pe"], W["vec"], W["w_in"], W["w_out"],
                              W["wqkv"], W["wo"], W["w1"], W["w2"]))
                         + B * OUT_SUBLANES * CLASS_PAD * 4)

    out = pl.pallas_call(
        partial(fused_transformer_kernel, nhead),
        out_shape=jax.ShapeDtypeStruct((B, OUT_SUBLANES, CLASS_PAD), jnp.float32),
        grid_spec=pltpu.PrefetchScalarGridSpec(
            num_scalar_prefetch=0,
            grid=(B,),
            in_specs=in_specs,
            out_specs=out_spec,
            scratch_shapes=[pltpu.VMEM((S, D), jnp.float32)],   # per-head ctx buffer
        ),
        compiler_params=pltpu.CompilerParams(
            dimension_semantics=("parallel",)),                 # v7x: 2nd TC used
        cost_estimate=pl.CostEstimate(flops=flops,
                                      transcendentals=transcendentals,
                                      bytes_accessed=bytes_accessed),
    )(x, W["pe"], W["vec"], W["w_in"], W["w_out"],
      W["wqkv"], W["wo"], W["w1"], W["w2"])

    return out[:, 0, :NUM_CLASSES]


# ----------------------------- parameter init & packing ----------------------

def make_positional_encoding(S, D):
    pos = np.arange(S, dtype=np.float32)[:, None]
    div = np.exp(np.arange(0, D, 2, dtype=np.float32) * (-math.log(10000.0) / D))
    pe = np.zeros((S, D), dtype=np.float32)
    pe[:, 0::2] = np.sin(pos * div)
    pe[:, 1::2] = np.cos(pos * div)
    return jnp.asarray(pe)


def init_params(key, input_dim, d_model, num_layers, seq_len):
    """Deterministic random f32 params; weights stored as (in, out)."""
    D = d_model
    counter = [0]

    def w(shape, scale=0.1):
        counter[0] += 1
        return jax.random.normal(jax.random.fold_in(key, counter[0]),
                                 shape, jnp.float32) * scale

    P = {
        "w_in": w((input_dim, D)),
        "b_in": w((1, D), 0.02),
        "pe": make_positional_encoding(seq_len, D),
        "w_out": w((D, NUM_CLASSES)),
        "b_out": w((1, NUM_CLASSES), 0.02),
        "layers": [],
    }
    for _ in range(num_layers):
        P["layers"].append({
            "wqkv": w((D, 3 * D)),
            "bqkv": w((1, 3 * D), 0.02),
            "wo":   w((D, D)),
            "bo":   w((1, D), 0.02),
            "ln1w": jnp.ones((1, D), jnp.float32),
            "ln1b": jnp.zeros((1, D), jnp.float32),
            "w1":   w((D, 4 * D)),
            "b1":   w((1, 4 * D), 0.02),
            "w2":   w((4 * D, D)),
            "b2":   w((1, D), 0.02),
            "ln2w": jnp.ones((1, D), jnp.float32),
            "ln2b": jnp.zeros((1, D), jnp.float32),
        })
    return P


def pack_params(P):
    """Init-time (one-off) packing: bias/LN vectors into one f32 slab, per-layer
    weight matrices stacked on a leading layer axis and cast to bf16."""
    D = P["w_in"].shape[1]
    L = len(P["layers"])
    vec_w = max(CLASS_PAD, 4 * D, 3 * D)
    rows = 2 + 8 * L
    rows_p = ((rows + 7) // 8) * 8                      # sublane-align the slab

    vec = np.zeros((rows_p, vec_w), np.float32)
    vec[0, :D] = np.asarray(P["b_in"])[0]
    vec[1, :CLASS_PAD] = NEG_INF                        # padded-class output bias
    vec[1, :NUM_CLASSES] = np.asarray(P["b_out"])[0]
    for l, lp in enumerate(P["layers"]):
        base = 2 + 8 * l
        vec[base + 0, :3 * D] = np.asarray(lp["bqkv"])[0]
        vec[base + 1, :D]     = np.asarray(lp["bo"])[0]
        vec[base + 2, :4 * D] = np.asarray(lp["b1"])[0]
        vec[base + 3, :D]     = np.asarray(lp["b2"])[0]
        vec[base + 4, :D]     = np.asarray(lp["ln1w"])[0]
        vec[base + 5, :D]     = np.asarray(lp["ln1b"])[0]
        vec[base + 6, :D]     = np.asarray(lp["ln2w"])[0]
        vec[base + 7, :D]     = np.asarray(lp["ln2b"])[0]

    w_out_pad = np.zeros((D, CLASS_PAD), np.float32)
    w_out_pad[:, :NUM_CLASSES] = np.asarray(P["w_out"])

    bf16 = jnp.bfloat16
    return {
        "pe": P["pe"],                                              # (S, D) f32
        "vec": jnp.asarray(vec),                                    # f32 slab
        "w_in": P["w_in"].astype(bf16),
        "w_out": jnp.asarray(w_out_pad).astype(bf16),
        "wqkv": jnp.stack([lp["wqkv"] for lp in P["layers"]]).astype(bf16),
        "wo":   jnp.stack([lp["wo"]   for lp in P["layers"]]).astype(bf16),
        "w1":   jnp.stack([lp["w1"]   for lp in P["layers"]]).astype(bf16),
        "w2":   jnp.stack([lp["w2"]   for lp in P["layers"]]).astype(bf16),
    }


# ----------------------------- pure-JAX reference (f32, HIGHEST) -------------

def _layer_norm(y, w, b, eps=1e-5):
    mu = jnp.mean(y, axis=-1, keepdims=True)
    var = jnp.mean((y - mu) ** 2, axis=-1, keepdims=True)
    return (y - mu) * jax.lax.rsqrt(var + eps) * w + b


def reference_forward(x, P, nhead):
    D = P["pe"].shape[1]
    h = jnp.dot(x, P["w_in"], precision=HI) + P["b_in"] + P["pe"]
    for lp in P["layers"]:
        B_, S_, _ = h.shape
        hd = D // nhead
        qkv = jnp.dot(h, lp["wqkv"], precision=HI) + lp["bqkv"]
        q, k, v = qkv[..., :D], qkv[..., D:2 * D], qkv[..., 2 * D:]
        sp = lambda t: t.reshape(B_, S_, nhead, hd).transpose(0, 2, 1, 3)
        qh, kh, vh = sp(q), sp(k), sp(v)
        s = jnp.einsum("bhqd,bhkd->bhqk", qh, kh, precision=HI) / math.sqrt(hd)
        p = jax.nn.softmax(s, axis=-1)
        o = jnp.einsum("bhqk,bhkd->bhqd", p, vh,
                       precision=HI).transpose(0, 2, 1, 3).reshape(B_, S_, D)
        o = jnp.dot(o, lp["wo"], precision=HI) + lp["bo"]
        y = _layer_norm(h + o, lp["ln1w"], lp["ln1b"])
        f = jnp.dot(jnp.maximum(jnp.dot(y, lp["w1"], precision=HI) + lp["b1"], 0.0),
                    lp["w2"], precision=HI) + lp["b2"]
        h = _layer_norm(y + f, lp["ln2w"], lp["ln2b"])
    logits = jnp.dot(h[:, 0, :], P["w_out"], precision=HI) + P["b_out"]
    return jax.nn.softmax(logits, axis=1)


# ----------------------------- main -------------------------------------------

if __name__ == "__main__":
    B, S, input_dim = 2, 8, 2
    d_model, nhead, num_layers = 32, 4, 2

    key = jax.random.PRNGKey(0)
    k_param, k_x = jax.random.split(key)
    P = init_params(k_param, input_dim, d_model, num_layers, S)
    W = pack_params(P)                                   # one-off, outside jit
    x = jax.random.normal(k_x, (B, S, input_dim), jnp.float32)

    out = jax.block_until_ready(transformer_forward(x, W, nhead))
    ref = jax.block_until_ready(reference_forward(x, P, nhead))

    # Kernel runs bf16 matmuls with f32 accumulation; reference is f32/HIGHEST,
    # so tolerances cover bf16-level error accumulated over 2 encoder layers.
    np.testing.assert_allclose(np.asarray(out), np.asarray(ref),
                               rtol=5e-2, atol=2e-2)
    assert np.allclose(np.asarray(out).sum(axis=-1), 1.0, atol=1e-3)
    print("KERNEL_OK")
</pallas_src>

<mosaic_0001>
module attributes {stable_mosaic.version = 11 : i64} {
  func.func @fused_transformer_kernel(%arg0: i32, %arg1: memref<1x8x2xf32, #tpu.memory_space<vmem>>, %arg2: memref<8x32xf32, #tpu.memory_space<vmem>>, %arg3: memref<24x128xf32, #tpu.memory_space<vmem>>, %arg4: memref<2x32xbf16, #tpu.memory_space<vmem>>, %arg5: memref<32x128xbf16, #tpu.memory_space<vmem>>, %arg6: memref<2x32x96xbf16, #tpu.memory_space<vmem>>, %arg7: memref<2x32x32xbf16, #tpu.memory_space<vmem>>, %arg8: memref<2x32x128xbf16, #tpu.memory_space<vmem>>, %arg9: memref<2x128x32xbf16, #tpu.memory_space<vmem>>, %arg10: memref<1x8x128xf32, #tpu.memory_space<vmem>>, %arg11: memref<8x32xf32, #tpu.memory_space<vmem>>) attributes {dimension_semantics = [#tpu.dimension_semantics<parallel>], iteration_bounds = array<i64: 2>, scalar_prefetch = 0 : i64, scratch_operands = 1 : i64, tpu.core_type = #tpu.core_type<tc>, window_params = [{transform_indices = @transform_0, window_bounds = array<i64: 1, 8, 2>}, {pipeline_mode = #tpu.pipeline_mode<synchronous>, transform_indices = @transform_1, window_bounds = array<i64: 8, 32>}, {pipeline_mode = #tpu.pipeline_mode<synchronous>, transform_indices = @transform_2, window_bounds = array<i64: 24, 128>}, {pipeline_mode = #tpu.pipeline_mode<synchronous>, transform_indices = @transform_3, window_bounds = array<i64: 2, 32>}, {pipeline_mode = #tpu.pipeline_mode<synchronous>, transform_indices = @transform_4, window_bounds = array<i64: 32, 128>}, {pipeline_mode = #tpu.pipeline_mode<synchronous>, transform_indices = @transform_5, window_bounds = array<i64: 2, 32, 96>}, {pipeline_mode = #tpu.pipeline_mode<synchronous>, transform_indices = @transform_6, window_bounds = array<i64: 2, 32, 32>}, {pipeline_mode = #tpu.pipeline_mode<synchronous>, transform_indices = @transform_7, window_bounds = array<i64: 2, 32, 128>}, {pipeline_mode = #tpu.pipeline_mode<synchronous>, transform_indices = @transform_8, window_bounds = array<i64: 2, 128, 32>}, {transform_indices = @transform_9, window_bounds = array<i64: 1, 8, 128>}]} {
    %c0 = arith.constant 0 : index
    %c0_0 = arith.constant 0 : index
    %0 = vector.load %arg3[%c0, %c0_0] : memref<24x128xf32, #tpu.memory_space<vmem>>, vector<1x32xf32>
    %c1 = arith.constant 1 : index
    %c0_1 = arith.constant 0 : index
    %1 = vector.load %arg3[%c1, %c0_1] : memref<24x128xf32, #tpu.memory_space<vmem>>, vector<1x128xf32>
    %c0_2 = arith.constant 0 : index
    %c0_3 = arith.constant 0 : index
    %c0_4 = arith.constant 0 : index
    %2 = vector.load %arg1[%c0_2, %c0_3, %c0_4] : memref<1x8x2xf32, #tpu.memory_space<vmem>>, vector<1x8x2xf32>
    %3 = vector.shape_cast %2 : vector<1x8x2xf32> to vector<8x2xf32>
    %4 = arith.truncf %3 : vector<8x2xf32> to vector<8x2xbf16>
    %c0_5 = arith.constant 0 : index
    %c0_6 = arith.constant 0 : index
    %5 = vector.load %arg4[%c0_5, %c0_6] : memref<2x32xbf16, #tpu.memory_space<vmem>>, vector<2x32xbf16>
    %cst = arith.constant dense<0.000000e+00> : vector<8x32xf32>
    %6 = tpu.matmul %4, %5, %cst {dimension_numbers = #tpu.dot_dimension_numbers<[1], [0], [0], [1], [0, 0, 1, 1], [], []>} : vector<8x2xbf16>, vector<2x32xbf16>, vector<8x32xf32> -> vector<8x32xf32>
    %7 = vector.broadcast %0 : vector<1x32xf32> to vector<8x32xf32>
    %8 = arith.addf %6, %7 : vector<8x32xf32>
    %c0_7 = arith.constant 0 : index
    %c0_8 = arith.constant 0 : index
    %9 = vector.load %arg2[%c0_7, %c0_8] : memref<8x32xf32, #tpu.memory_space<vmem>>, vector<8x32xf32>
    %10 = arith.addf %8, %9 : vector<8x32xf32>
    %c2 = arith.constant 2 : index
    %c0_9 = arith.constant 0 : index
    %11 = vector.load %arg3[%c2, %c0_9] : memref<24x128xf32, #tpu.memory_space<vmem>>, vector<1x96xf32>
    %c3 = arith.constant 3 : index
    %c0_10 = arith.constant 0 : index
    %12 = vector.load %arg3[%c3, %c0_10] : memref<24x128xf32, #tpu.memory_space<vmem>>, vector<1x32xf32>
    %c4 = arith.constant 4 : index
    %c0_11 = arith.constant 0 : index
    %13 = vector.load %arg3[%c4, %c0_11] : memref<24x128xf32, #tpu.memory_space<vmem>>, vector<1x128xf32>
    %c5 = arith.constant 5 : index
    %c0_12 = arith.constant 0 : index
    %14 = vector.load %arg3[%c5, %c0_12] : memref<24x128xf32, #tpu.memory_space<vmem>>, vector<1x32xf32>
    %c6 = arith.constant 6 : index
    %c0_13 = arith.constant 0 : index
    %15 = vector.load %arg3[%c6, %c0_13] : memref<24x128xf32, #tpu.memory_space<vmem>>, vector<1x32xf32>
    %c7 = arith.constant 7 : index
    %c0_14 = arith.constant 0 : index
    %16 = vector.load %arg3[%c7, %c0_14] : memref<24x128xf32, #tpu.memory_space<vmem>>, vector<1x32xf32>
    %c8 = arith.constant 8 : index
    %c0_15 = arith.constant 0 : index
    %17 = vector.load %arg3[%c8, %c0_15] : memref<24x128xf32, #tpu.memory_space<vmem>>, vector<1x32xf32>
    %c9 = arith.constant 9 : index
    %c0_16 = arith.constant 0 : index
    %18 = vector.load %arg3[%c9, %c0_16] : memref<24x128xf32, #tpu.memory_space<vmem>>, vector<1x32xf32>
    %19 = arith.truncf %10 : vector<8x32xf32> to vector<8x32xbf16>
    %c0_17 = arith.constant 0 : index
    %c0_18 = arith.constant 0 : index
    %c0_19 = arith.constant 0 : index
    %20 = vector.load %arg6[%c0_17, %c0_18, %c0_19] : memref<2x32x96xbf16, #tpu.memory_space<vmem>>, vector<1x32x96xbf16>
    %21 = vector.shape_cast %20 : vector<1x32x96xbf16> to vector<32x96xbf16>
    %cst_20 = arith.constant dense<0.000000e+00> : vector<8x96xf32>
    %22 = tpu.matmul %19, %21, %cst_20 {dimension_numbers = #tpu.dot_dimension_numbers<[1], [0], [0], [1], [0, 0, 1, 1], [], []>} : vector<8x32xbf16>, vector<32x96xbf16>, vector<8x96xf32> -> vector<8x96xf32>
    %23 = vector.broadcast %11 : vector<1x96xf32> to vector<8x96xf32>
    %24 = arith.addf %22, %23 : vector<8x96xf32>
    %25 = vector.extract_strided_slice %24 {offsets = [0, 0], sizes = [8, 8], strides = [1, 1]} : vector<8x96xf32> to vector<8x8xf32>
    %cst_21 = arith.constant 0.353553385 : f32
    %26 = vector.broadcast %cst_21 : f32 to vector<8x8xf32>
    %27 = arith.mulf %25, %26 : vector<8x8xf32>
    %28 = arith.truncf %27 : vector<8x8xf32> to vector<8x8xbf16>
    %29 = vector.extract_strided_slice %24 {offsets = [0, 32], sizes = [8, 8], strides = [1, 1]} : vector<8x96xf32> to vector<8x8xf32>
    %30 = tpu.transpose %29, [1, 0] : vector<8x8xf32> -> vector<8x8xf32>
    %31 = arith.truncf %30 : vector<8x8xf32> to vector<8x8xbf16>
    %32 = vector.extract_strided_slice %24 {offsets = [0, 64], sizes = [8, 8], strides = [1, 1]} : vector<8x96xf32> to vector<8x8xf32>
    %33 = arith.truncf %32 : vector<8x8xf32> to vector<8x8xbf16>
    %cst_22 = arith.constant dense<0.000000e+00> : vector<8x8xf32>
    %34 = tpu.matmul %28, %31, %cst_22 {dimension_numbers = #tpu.dot_dimension_numbers<[1], [0], [0], [1], [0, 0, 1, 1], [], []>} : vector<8x8xbf16>, vector<8x8xbf16>, vector<8x8xf32> -> vector<8x8xf32>
    %cst_23 = arith.constant dense<0xFF800000> : vector<8xf32>
    %35 = vector.multi_reduction <maximumf>, %34, %cst_23 [1] : vector<8x8xf32> to vector<8xf32>
    %36 = vector.shape_cast %35 : vector<8xf32> to vector<8x1xf32>
    %37 = vector.broadcast %36 : vector<8x1xf32> to vector<8x8xf32>
    %38 = arith.subf %34, %37 : vector<8x8xf32>
    %39 = math.exp %38 : vector<8x8xf32>
    %cst_24 = arith.constant dense<0.000000e+00> : vector<8xf32>
    %40 = vector.multi_reduction <add>, %39, %cst_24 [1] : vector<8x8xf32> to vector<8xf32>
    %41 = vector.shape_cast %40 : vector<8xf32> to vector<8x1xf32>
    %42 = tpu.reciprocal %41 : vector<8x1xf32> -> vector<8x1xf32>
    %43 = vector.broadcast %42 : vector<8x1xf32> to vector<8x8xf32>
    %44 = arith.mulf %39, %43 : vector<8x8xf32>
    %45 = arith.truncf %44 : vector<8x8xf32> to vector<8x8xbf16>
    %cst_25 = arith.constant dense<0.000000e+00> : vector<8x8xf32>
    %46 = tpu.matmul %45, %33, %cst_25 {dimension_numbers = #tpu.dot_dimension_numbers<[1], [0], [0], [1], [0, 0, 1, 1], [], []>} : vector<8x8xbf16>, vector<8x8xbf16>, vector<8x8xf32> -> vector<8x8xf32>
    %c0_26 = arith.constant 0 : index
    %c0_27 = arith.constant 0 : index
    %47 = vector.load %arg11[%c0_26, %c0_27] : memref<8x32xf32, #tpu.memory_space<vmem>>, vector<8x8xf32>
    tpu.vector_store %arg11[%c0_26, %c0_27], %46 {strides = array<i32>} : memref<8x32xf32, #tpu.memory_space<vmem>>, vector<8x8xf32>,
    %48 = vector.extract_strided_slice %24 {offsets = [0, 8], sizes = [8, 8], strides = [1, 1]} : vector<8x96xf32> to vector<8x8xf32>
    %cst_28 = arith.constant 0.353553385 : f32
    %49 = vector.broadcast %cst_28 : f32 to vector<8x8xf32>
    %50 = arith.mulf %48, %49 : vector<8x8xf32>
    %51 = arith.truncf %50 : vector<8x8xf32> to vector<8x8xbf16>
    %52 = vector.extract_strided_slice %24 {offsets = [0, 40], sizes = [8, 8], strides = [1, 1]} : vector<8x96xf32> to vector<8x8xf32>
    %53 = tpu.transpose %52, [1, 0] : vector<8x8xf32> -> vector<8x8xf32>
    %54 = arith.truncf %53 : vector<8x8xf32> to vector<8x8xbf16>
    %55 = vector.extract_strided_slice %24 {offsets = [0, 72], sizes = [8, 8], strides = [1, 1]} : vector<8x96xf32> to vector<8x8xf32>
    %56 = arith.truncf %55 : vector<8x8xf32> to vector<8x8xbf16>
    %cst_29 = arith.constant dense<0.000000e+00> : vector<8x8xf32>
    %57 = tpu.matmul %51, %54, %cst_29 {dimension_numbers = #tpu.dot_dimension_numbers<[1], [0], [0], [1], [0, 0, 1, 1], [], []>} : vector<8x8xbf16>, vector<8x8xbf16>, vector<8x8xf32> -> vector<8x8xf32>
    %cst_30 = arith.constant dense<0xFF800000> : vector<8xf32>
    %58 = vector.multi_reduction <maximumf>, %57, %cst_30 [1] : vector<8x8xf32> to vector<8xf32>
    %59 = vector.shape_cast %58 : vector<8xf32> to vector<8x1xf32>
    %60 = vector.broadcast %59 : vector<8x1xf32> to vector<8x8xf32>
    %61 = arith.subf %57, %60 : vector<8x8xf32>
    %62 = math.exp %61 : vector<8x8xf32>
    %cst_31 = arith.constant dense<0.000000e+00> : vector<8xf32>
    %63 = vector.multi_reduction <add>, %62, %cst_31 [1] : vector<8x8xf32> to vector<8xf32>
    %64 = vector.shape_cast %63 : vector<8xf32> to vector<8x1xf32>
    %65 = tpu.reciprocal %64 : vector<8x1xf32> -> vector<8x1xf32>
    %66 = vector.broadcast %65 : vector<8x1xf32> to vector<8x8xf32>
    %67 = arith.mulf %62, %66 : vector<8x8xf32>
    %68 = arith.truncf %67 : vector<8x8xf32> to vector<8x8xbf16>
    %cst_32 = arith.constant dense<0.000000e+00> : vector<8x8xf32>
    %69 = tpu.matmul %68, %56, %cst_32 {dimension_numbers = #tpu.dot_dimension_numbers<[1], [0], [0], [1], [0, 0, 1, 1], [], []>} : vector<8x8xbf16>, vector<8x8xbf16>, vector<8x8xf32> -> vector<8x8xf32>
    %c0_33 = arith.constant 0 : index
    %c8_34 = arith.constant 8 : index
    %70 = vector.load %arg11[%c0_33, %c8_34] : memref<8x32xf32, #tpu.memory_space<vmem>>, vector<8x8xf32>
    tpu.vector_store %arg11[%c0_33, %c8_34], %69 {strides = array<i32>} : memref<8x32xf32, #tpu.memory_space<vmem>>, vector<8x8xf32>,
    %71 = vector.extract_strided_slice %24 {offsets = [0, 16], sizes = [8, 8], strides = [1, 1]} : vector<8x96xf32> to vector<8x8xf32>
    %cst_35 = arith.constant 0.353553385 : f32
    %72 = vector.broadcast %cst_35 : f32 to vector<8x8xf32>
    %73 = arith.mulf %71, %72 : vector<8x8xf32>
    %74 = arith.truncf %73 : vector<8x8xf32> to vector<8x8xbf16>
    %75 = vector.extract_strided_slice %24 {offsets = [0, 48], sizes = [8, 8], strides = [1, 1]} : vector<8x96xf32> to vector<8x8xf32>
    %76 = tpu.transpose %75, [1, 0] : vector<8x8xf32> -> vector<8x8xf32>
    %77 = arith.truncf %76 : vector<8x8xf32> to vector<8x8xbf16>
    %78 = vector.extract_strided_slice %24 {offsets = [0, 80], sizes = [8, 8], strides = [1, 1]} : vector<8x96xf32> to vector<8x8xf32>
    %79 = arith.truncf %78 : vector<8x8xf32> to vector<8x8xbf16>
    %cst_36 = arith.constant dense<0.000000e+00> : vector<8x8xf32>
    %80 = tpu.matmul %74, %77, %cst_36 {dimension_numbers = #tpu.dot_dimension_numbers<[1], [0], [0], [1], [0, 0, 1, 1], [], []>} : vector<8x8xbf16>, vector<8x8xbf16>, vector<8x8xf32> -> vector<8x8xf32>
    %cst_37 = arith.constant dense<0xFF800000> : vector<8xf32>
    %81 = vector.multi_reduction <maximumf>, %80, %cst_37 [1] : vector<8x8xf32> to vector<8xf32>
    %82 = vector.shape_cast %81 : vector<8xf32> to vector<8x1xf32>
    %83 = vector.broadcast %82 : vector<8x1xf32> to vector<8x8xf32>
    %84 = arith.subf %80, %83 : vector<8x8xf32>
    %85 = math.exp %84 : vector<8x8xf32>
    %cst_38 = arith.constant dense<0.000000e+00> : vector<8xf32>
    %86 = vector.multi_reduction <add>, %85, %cst_38 [1] : vector<8x8xf32> to vector<8xf32>
    %87 = vector.shape_cast %86 : vector<8xf32> to vector<8x1xf32>
    %88 = tpu.reciprocal %87 : vector<8x1xf32> -> vector<8x1xf32>
    %89 = vector.broadcast %88 : vector<8x1xf32> to vector<8x8xf32>
    %90 = arith.mulf %85, %89 : vector<8x8xf32>
    %91 = arith.truncf %90 : vector<8x8xf32> to vector<8x8xbf16>
    %cst_39 = arith.constant dense<0.000000e+00> : vector<8x8xf32>
    %92 = tpu.matmul %91, %79, %cst_39 {dimension_numbers = #tpu.dot_dimension_numbers<[1], [0], [0], [1], [0, 0, 1, 1], [], []>} : vector<8x8xbf16>, vector<8x8xbf16>, vector<8x8xf32> -> vector<8x8xf32>
    %c0_40 = arith.constant 0 : index
    %c16 = arith.constant 16 : index
    %93 = vector.load %arg11[%c0_40, %c16] : memref<8x32xf32, #tpu.memory_space<vmem>>, vector<8x8xf32>
    tpu.vector_store %arg11[%c0_40, %c16], %92 {strides = array<i32>} : memref<8x32xf32, #tpu.memory_space<vmem>>, vector<8x8xf32>,
    %94 = vector.extract_strided_slice %24 {offsets = [0, 24], sizes = [8, 8], strides = [1, 1]} : vector<8x96xf32> to vector<8x8xf32>
    %cst_41 = arith.constant 0.353553385 : f32
    %95 = vector.broadcast %cst_41 : f32 to vector<8x8xf32>
    %96 = arith.mulf %94, %95 : vector<8x8xf32>
    %97 = arith.truncf %96 : vector<8x8xf32> to vector<8x8xbf16>
    %98 = vector.extract_strided_slice %24 {offsets = [0, 56], sizes = [8, 8], strides = [1, 1]} : vector<8x96xf32> to vector<8x8xf32>
    %99 = tpu.transpose %98, [1, 0] : vector<8x8xf32> -> vector<8x8xf32>
    %100 = arith.truncf %99 : vector<8x8xf32> to vector<8x8xbf16>
    %101 = vector.extract_strided_slice %24 {offsets = [0, 88], sizes = [8, 8], strides = [1, 1]} : vector<8x96xf32> to vector<8x8xf32>
    %102 = arith.truncf %101 : vector<8x8xf32> to vector<8x8xbf16>
    %cst_42 = arith.constant dense<0.000000e+00> : vector<8x8xf32>
    %103 = tpu.matmul %97, %100, %cst_42 {dimension_numbers = #tpu.dot_dimension_numbers<[1], [0], [0], [1], [0, 0, 1, 1], [], []>} : vector<8x8xbf16>, vector<8x8xbf16>, vector<8x8xf32> -> vector<8x8xf32>
    %cst_43 = arith.constant dense<0xFF800000> : vector<8xf32>
    %104 = vector.multi_reduction <maximumf>, %103, %cst_43 [1] : vector<8x8xf32> to vector<8xf32>
    %105 = vector.shape_cast %104 : vector<8xf32> to vector<8x1xf32>
    %106 = vector.broadcast %105 : vector<8x1xf32> to vector<8x8xf32>
    %107 = arith.subf %103, %106 : vector<8x8xf32>
    %108 = math.exp %107 : vector<8x8xf32>
    %cst_44 = arith.constant dense<0.000000e+00> : vector<8xf32>
    %109 = vector.multi_reduction <add>, %108, %cst_44 [1] : vector<8x8xf32> to vector<8xf32>
    %110 = vector.shape_cast %109 : vector<8xf32> to vector<8x1xf32>
    %111 = tpu.reciprocal %110 : vector<8x1xf32> -> vector<8x1xf32>
    %112 = vector.broadcast %111 : vector<8x1xf32> to vector<8x8xf32>
    %113 = arith.mulf %108, %112 : vector<8x8xf32>
    %114 = arith.truncf %113 : vector<8x8xf32> to vector<8x8xbf16>
    %cst_45 = arith.constant dense<0.000000e+00> : vector<8x8xf32>
    %115 = tpu.matmul %114, %102, %cst_45 {dimension_numbers = #tpu.dot_dimension_numbers<[1], [0], [0], [1], [0, 0, 1, 1], [], []>} : vector<8x8xbf16>, vector<8x8xbf16>, vector<8x8xf32> -> vector<8x8xf32>
    %c0_46 = arith.constant 0 : index
    %c24 = arith.constant 24 : index
    %116 = vector.load %arg11[%c0_46, %c24] : memref<8x32xf32, #tpu.memory_space<vmem>>, vector<8x8xf32>
    tpu.vector_store %arg11[%c0_46, %c24], %115 {strides = array<i32>} : memref<8x32xf32, #tpu.memory_space<vmem>>, vector<8x8xf32>,
    %c0_47 = arith.constant 0 : index
    %c0_48 = arith.constant 0 : index
    %117 = vector.load %arg11[%c0_47, %c0_48] : memref<8x32xf32, #tpu.memory_space<vmem>>, vector<8x32xf32>
    %118 = arith.truncf %117 : vector<8x32xf32> to vector<8x32xbf16>
    %c0_49 = arith.constant 0 : index
    %c0_50 = arith.constant 0 : index
    %c0_51 = arith.constant 0 : index
    %119 = vector.load %arg7[%c0_49, %c0_50, %c0_51] : memref<2x32x32xbf16, #tpu.memory_space<vmem>>, vector<1x32x32xbf16>
    %120 = vector.shape_cast %119 : vector<1x32x32xbf16> to vector<32x32xbf16>
    %cst_52 = arith.constant dense<0.000000e+00> : vector<8x32xf32>
    %121 = tpu.matmul %118, %120, %cst_52 {dimension_numbers = #tpu.dot_dimension_numbers<[1], [0], [0], [1], [0, 0, 1, 1], [], []>} : vector<8x32xbf16>, vector<32x32xbf16>, vector<8x32xf32> -> vector<8x32xf32>
    %122 = vector.broadcast %12 : vector<1x32xf32> to vector<8x32xf32>
    %123 = arith.addf %121, %122 : vector<8x32xf32>
    %124 = arith.addf %10, %123 : vector<8x32xf32>
    %cst_53 = arith.constant dense<0.000000e+00> : vector<8xf32>
    %125 = vector.multi_reduction <add>, %124, %cst_53 [1] : vector<8x32xf32> to vector<8xf32>
    %126 = vector.shape_cast %125 : vector<8xf32> to vector<8x1xf32>
    %cst_54 = arith.constant 3.200000e+01 : f32
    %127 = vector.broadcast %cst_54 : f32 to vector<8x1xf32>
    %128 = arith.divf %126, %127 : vector<8x1xf32>
    %129 = vector.broadcast %128 : vector<8x1xf32> to vector<8x32xf32>
    %130 = arith.subf %124, %129 : vector<8x32xf32>
    %131 = arith.mulf %130, %130 : vector<8x32xf32>
    %cst_55 = arith.constant dense<0.000000e+00> : vector<8xf32>
    %132 = vector.multi_reduction <add>, %131, %cst_55 [1] : vector<8x32xf32> to vector<8xf32>
    %133 = vector.shape_cast %132 : vector<8xf32> to vector<8x1xf32>
    %cst_56 = arith.constant 3.200000e+01 : f32
    %134 = vector.broadcast %cst_56 : f32 to vector<8x1xf32>
    %135 = arith.divf %133, %134 : vector<8x1xf32>
    %136 = vector.broadcast %128 : vector<8x1xf32> to vector<8x32xf32>
    %137 = arith.subf %124, %136 : vector<8x32xf32>
    %cst_57 = arith.constant 9.99999974E-6 : f32
    %138 = vector.broadcast %cst_57 : f32 to vector<8x1xf32>
    %139 = arith.addf %135, %138 : vector<8x1xf32>
    %140 = math.rsqrt %139 : vector<8x1xf32>
    %141 = vector.broadcast %140 : vector<8x1xf32> to vector<8x32xf32>
    %142 = arith.mulf %137, %141 : vector<8x32xf32>
    %143 = vector.broadcast %15 : vector<1x32xf32> to vector<8x32xf32>
    %144 = arith.mulf %142, %143 : vector<8x32xf32>
    %145 = vector.broadcast %16 : vector<1x32xf32> to vector<8x32xf32>
    %146 = arith.addf %144, %145 : vector<8x32xf32>
    %147 = arith.truncf %146 : vector<8x32xf32> to vector<8x32xbf16>
    %c0_58 = arith.constant 0 : index
    %c0_59 = arith.constant 0 : index
    %c0_60 = arith.constant 0 : index
    %148 = vector.load %arg8[%c0_58, %c0_59, %c0_60] : memref<2x32x128xbf16, #tpu.memory_space<vmem>>, vector<1x32x128xbf16>
    %149 = vector.shape_cast %148 : vector<1x32x128xbf16> to vector<32x128xbf16>
    %cst_61 = arith.constant dense<0.000000e+00> : vector<8x128xf32>
    %150 = tpu.matmul %147, %149, %cst_61 {dimension_numbers = #tpu.dot_dimension_numbers<[1], [0], [0], [1], [0, 0, 1, 1], [], []>} : vector<8x32xbf16>, vector<32x128xbf16>, vector<8x128xf32> -> vector<8x128xf32>
    %151 = vector.broadcast %13 : vector<1x128xf32> to vector<8x128xf32>
    %152 = arith.addf %150, %151 : vector<8x128xf32>
    %cst_62 = arith.constant 0.000000e+00 : f32
    %153 = vector.broadcast %cst_62 : f32 to vector<8x128xf32>
    %154 = arith.maximumf %152, %153 : vector<8x128xf32>
    %155 = arith.truncf %154 : vector<8x128xf32> to vector<8x128xbf16>
    %c0_63 = arith.constant 0 : index
    %c0_64 = arith.constant 0 : index
    %c0_65 = arith.constant 0 : index
    %156 = vector.load %arg9[%c0_63, %c0_64, %c0_65] : memref<2x128x32xbf16, #tpu.memory_space<vmem>>, vector<1x128x32xbf16>
    %157 = vector.shape_cast %156 : vector<1x128x32xbf16> to vector<128x32xbf16>
    %cst_66 = arith.constant dense<0.000000e+00> : vector<8x32xf32>
    %158 = tpu.matmul %155, %157, %cst_66 {dimension_numbers = #tpu.dot_dimension_numbers<[1], [0], [0], [1], [0, 0, 1, 1], [], []>} : vector<8x128xbf16>, vector<128x32xbf16>, vector<8x32xf32> -> vector<8x32xf32>
    %159 = vector.broadcast %14 : vector<1x32xf32> to vector<8x32xf32>
    %160 = arith.addf %158, %159 : vector<8x32xf32>
    %161 = arith.addf %146, %160 : vector<8x32xf32>
    %cst_67 = arith.constant dense<0.000000e+00> : vector<8xf32>
    %162 = vector.multi_reduction <add>, %161, %cst_67 [1] : vector<8x32xf32> to vector<8xf32>
    %163 = vector.shape_cast %162 : vector<8xf32> to vector<8x1xf32>
    %cst_68 = arith.constant 3.200000e+01 : f32
    %164 = vector.broadcast %cst_68 : f32 to vector<8x1xf32>
    %165 = arith.divf %163, %164 : vector<8x1xf32>
    %166 = vector.broadcast %165 : vector<8x1xf32> to vector<8x32xf32>
    %167 = arith.subf %161, %166 : vector<8x32xf32>
    %168 = arith.mulf %167, %167 : vector<8x32xf32>
    %cst_69 = arith.constant dense<0.000000e+00> : vector<8xf32>
    %169 = vector.multi_reduction <add>, %168, %cst_69 [1] : vector<8x32xf32> to vector<8xf32>
    %170 = vector.shape_cast %169 : vector<8xf32> to vector<8x1xf32>
    %cst_70 = arith.constant 3.200000e+01 : f32
    %171 = vector.broadcast %cst_70 : f32 to vector<8x1xf32>
    %172 = arith.divf %170, %171 : vector<8x1xf32>
    %173 = vector.broadcast %165 : vector<8x1xf32> to vector<8x32xf32>
    %174 = arith.subf %161, %173 : vector<8x32xf32>
    %cst_71 = arith.constant 9.99999974E-6 : f32
    %175 = vector.broadcast %cst_71 : f32 to vector<8x1xf32>
    %176 = arith.addf %172, %175 : vector<8x1xf32>
    %177 = math.rsqrt %176 : vector<8x1xf32>
    %178 = vector.broadcast %177 : vector<8x1xf32> to vector<8x32xf32>
    %179 = arith.mulf %174, %178 : vector<8x32xf32>
    %180 = vector.broadcast %17 : vector<1x32xf32> to vector<8x32xf32>
    %181 = arith.mulf %179, %180 : vector<8x32xf32>
    %182 = vector.broadcast %18 : vector<1x32xf32> to vector<8x32xf32>
    %183 = arith.addf %181, %182 : vector<8x32xf32>
    %c10 = arith.constant 10 : index
    %c0_72 = arith.constant 0 : index
    %184 = vector.load %arg3[%c10, %c0_72] : memref<24x128xf32, #tpu.memory_space<vmem>>, vector<1x96xf32>
    %c11 = arith.constant 11 : index
    %c0_73 = arith.constant 0 : index
    %185 = vector.load %arg3[%c11, %c0_73] : memref<24x128xf32, #tpu.memory_space<vmem>>, vector<1x32xf32>
    %c12 = arith.constant 12 : index
    %c0_74 = arith.constant 0 : index
    %186 = vector.load %arg3[%c12, %c0_74] : memref<24x128xf32, #tpu.memory_space<vmem>>, vector<1x128xf32>
    %c13 = arith.constant 13 : index
    %c0_75 = arith.constant 0 : index
    %187 = vector.load %arg3[%c13, %c0_75] : memref<24x128xf32, #tpu.memory_space<vmem>>, vector<1x32xf32>
    %c14 = arith.constant 14 : index
    %c0_76 = arith.constant 0 : index
    %188 = vector.load %arg3[%c14, %c0_76] : memref<24x128xf32, #tpu.memory_space<vmem>>, vector<1x32xf32>
    %c15 = arith.constant 15 : index
    %c0_77 = arith.constant 0 : index
    %189 = vector.load %arg3[%c15, %c0_77] : memref<24x128xf32, #tpu.memory_space<vmem>>, vector<1x32xf32>
    %c16_78 = arith.constant 16 : index
    %c0_79 = arith.constant 0 : index
    %190 = vector.load %arg3[%c16_78, %c0_79] : memref<24x128xf32, #tpu.memory_space<vmem>>, vector<1x32xf32>
    %c17 = arith.constant 17 : index
    %c0_80 = arith.constant 0 : index
    %191 = vector.load %arg3[%c17, %c0_80] : memref<24x128xf32, #tpu.memory_space<vmem>>, vector<1x32xf32>
    %192 = arith.truncf %183 : vector<8x32xf32> to vector<8x32xbf16>
    %c1_81 = arith.constant 1 : index
    %c0_82 = arith.constant 0 : index
    %c0_83 = arith.constant 0 : index
    %193 = vector.load %arg6[%c1_81, %c0_82, %c0_83] : memref<2x32x96xbf16, #tpu.memory_space<vmem>>, vector<1x32x96xbf16>
    %194 = vector.shape_cast %193 : vector<1x32x96xbf16> to vector<32x96xbf16>
    %cst_84 = arith.constant dense<0.000000e+00> : vector<8x96xf32>
    %195 = tpu.matmul %192, %194, %cst_84 {dimension_numbers = #tpu.dot_dimension_numbers<[1], [0], [0], [1], [0, 0, 1, 1], [], []>} : vector<8x32xbf16>, vector<32x96xbf16>, vector<8x96xf32> -> vector<8x96xf32>
    %196 = vector.broadcast %184 : vector<1x96xf32> to vector<8x96xf32>
    %197 = arith.addf %195, %196 : vector<8x96xf32>
    %198 = vector.extract_strided_slice %197 {offsets = [0, 0], sizes = [8, 8], strides = [1, 1]} : vector<8x96xf32> to vector<8x8xf32>
    %cst_85 = arith.constant 0.353553385 : f32
    %199 = vector.broadcast %cst_85 : f32 to vector<8x8xf32>
    %200 = arith.mulf %198, %199 : vector<8x8xf32>
    %201 = arith.truncf %200 : vector<8x8xf32> to vector<8x8xbf16>
    %202 = vector.extract_strided_slice %197 {offsets = [0, 32], sizes = [8, 8], strides = [1, 1]} : vector<8x96xf32> to vector<8x8xf32>
    %203 = tpu.transpose %202, [1, 0] : vector<8x8xf32> -> vector<8x8xf32>
    %204 = arith.truncf %203 : vector<8x8xf32> to vector<8x8xbf16>
    %205 = vector.extract_strided_slice %197 {offsets = [0, 64], sizes = [8, 8], strides = [1, 1]} : vector<8x96xf32> to vector<8x8xf32>
    %206 = arith.truncf %205 : vector<8x8xf32> to vector<8x8xbf16>
    %cst_86 = arith.constant dense<0.000000e+00> : vector<8x8xf32>
    %207 = tpu.matmul %201, %204, %cst_86 {dimension_numbers = #tpu.dot_dimension_numbers<[1], [0], [0], [1], [0, 0, 1, 1], [], []>} : vector<8x8xbf16>, vector<8x8xbf16>, vector<8x8xf32> -> vector<8x8xf32>
    %cst_87 = arith.constant dense<0xFF800000> : vector<8xf32>
    %208 = vector.multi_reduction <maximumf>, %207, %cst_87 [1] : vector<8x8xf32> to vector<8xf32>
    %209 = vector.shape_cast %208 : vector<8xf32> to vector<8x1xf32>
    %210 = vector.broadcast %209 : vector<8x1xf32> to vector<8x8xf32>
    %211 = arith.subf %207, %210 : vector<8x8xf32>
    %212 = math.exp %211 : vector<8x8xf32>
    %cst_88 = arith.constant dense<0.000000e+00> : vector<8xf32>
    %213 = vector.multi_reduction <add>, %212, %cst_88 [1] : vector<8x8xf32> to vector<8xf32>
    %214 = vector.shape_cast %213 : vector<8xf32> to vector<8x1xf32>
    %215 = tpu.reciprocal %214 : vector<8x1xf32> -> vector<8x1xf32>
    %216 = vector.broadcast %215 : vector<8x1xf32> to vector<8x8xf32>
    %217 = arith.mulf %212, %216 : vector<8x8xf32>
    %218 = arith.truncf %217 : vector<8x8xf32> to vector<8x8xbf16>
    %cst_89 = arith.constant dense<0.000000e+00> : vector<8x8xf32>
    %219 = tpu.matmul %218, %206, %cst_89 {dimension_numbers = #tpu.dot_dimension_numbers<[1], [0], [0], [1], [0, 0, 1, 1], [], []>} : vector<8x8xbf16>, vector<8x8xbf16>, vector<8x8xf32> -> vector<8x8xf32>
    %c0_90 = arith.constant 0 : index
    %c0_91 = arith.constant 0 : index
    %220 = vector.load %arg11[%c0_90, %c0_91] : memref<8x32xf32, #tpu.memory_space<vmem>>, vector<8x8xf32>
    tpu.vector_store %arg11[%c0_90, %c0_91], %219 {strides = array<i32>} : memref<8x32xf32, #tpu.memory_space<vmem>>, vector<8x8xf32>,
    %221 = vector.extract_strided_slice %197 {offsets = [0, 8], sizes = [8, 8], strides = [1, 1]} : vector<8x96xf32> to vector<8x8xf32>
    %cst_92 = arith.constant 0.353553385 : f32
    %222 = vector.broadcast %cst_92 : f32 to vector<8x8xf32>
    %223 = arith.mulf %221, %222 : vector<8x8xf32>
    %224 = arith.truncf %223 : vector<8x8xf32> to vector<8x8xbf16>
    %225 = vector.extract_strided_slice %197 {offsets = [0, 40], sizes = [8, 8], strides = [1, 1]} : vector<8x96xf32> to vector<8x8xf32>
    %226 = tpu.transpose %225, [1, 0] : vector<8x8xf32> -> vector<8x8xf32>
    %227 = arith.truncf %226 : vector<8x8xf32> to vector<8x8xbf16>
    %228 = vector.extract_strided_slice %197 {offsets = [0, 72], sizes = [8, 8], strides = [1, 1]} : vector<8x96xf32> to vector<8x8xf32>
    %229 = arith.truncf %228 : vector<8x8xf32> to vector<8x8xbf16>
    %cst_93 = arith.constant dense<0.000000e+00> : vector<8x8xf32>
    %230 = tpu.matmul %224, %227, %cst_93 {dimension_numbers = #tpu.dot_dimension_numbers<[1], [0], [0], [1], [0, 0, 1, 1], [], []>} : vector<8x8xbf16>, vector<8x8xbf16>, vector<8x8xf32> -> vector<8x8xf32>
    %cst_94 = arith.constant dense<0xFF800000> : vector<8xf32>
    %231 = vector.multi_reduction <maximumf>, %230, %cst_94 [1] : vector<8x8xf32> to vector<8xf32>
    %232 = vector.shape_cast %231 : vector<8xf32> to vector<8x1xf32>
    %233 = vector.broadcast %232 : vector<8x1xf32> to vector<8x8xf32>
    %234 = arith.subf %230, %233 : vector<8x8xf32>
    %235 = math.exp %234 : vector<8x8xf32>
    %cst_95 = arith.constant dense<0.000000e+00> : vector<8xf32>
    %236 = vector.multi_reduction <add>, %235, %cst_95 [1] : vector<8x8xf32> to vector<8xf32>
    %237 = vector.shape_cast %236 : vector<8xf32> to vector<8x1xf32>
    %238 = tpu.reciprocal %237 : vector<8x1xf32> -> vector<8x1xf32>
    %239 = vector.broadcast %238 : vector<8x1xf32> to vector<8x8xf32>
    %240 = arith.mulf %235, %239 : vector<8x8xf32>
    %241 = arith.truncf %240 : vector<8x8xf32> to vector<8x8xbf16>
    %cst_96 = arith.constant dense<0.000000e+00> : vector<8x8xf32>
    %242 = tpu.matmul %241, %229, %cst_96 {dimension_numbers = #tpu.dot_dimension_numbers<[1], [0], [0], [1], [0, 0, 1, 1], [], []>} : vector<8x8xbf16>, vector<8x8xbf16>, vector<8x8xf32> -> vector<8x8xf32>
    %c0_97 = arith.constant 0 : index
    %c8_98 = arith.constant 8 : index
    %243 = vector.load %arg11[%c0_97, %c8_98] : memref<8x32xf32, #tpu.memory_space<vmem>>, vector<8x8xf32>
    tpu.vector_store %arg11[%c0_97, %c8_98], %242 {strides = array<i32>} : memref<8x32xf32, #tpu.memory_space<vmem>>, vector<8x8xf32>,
    %244 = vector.extract_strided_slice %197 {offsets = [0, 16], sizes = [8, 8], strides = [1, 1]} : vector<8x96xf32> to vector<8x8xf32>
    %cst_99 = arith.constant 0.353553385 : f32
    %245 = vector.broadcast %cst_99 : f32 to vector<8x8xf32>
    %246 = arith.mulf %244, %245 : vector<8x8xf32>
    %247 = arith.truncf %246 : vector<8x8xf32> to vector<8x8xbf16>
    %248 = vector.extract_strided_slice %197 {offsets = [0, 48], sizes = [8, 8], strides = [1, 1]} : vector<8x96xf32> to vector<8x8xf32>
    %249 = tpu.transpose %248, [1, 0] : vector<8x8xf32> -> vector<8x8xf32>
    %250 = arith.truncf %249 : vector<8x8xf32> to vector<8x8xbf16>
    %251 = vector.extract_strided_slice %197 {offsets = [0, 80], sizes = [8, 8], strides = [1, 1]} : vector<8x96xf32> to vector<8x8xf32>
    %252 = arith.truncf %251 : vector<8x8xf32> to vector<8x8xbf16>
    %cst_100 = arith.constant dense<0.000000e+00> : vector<8x8xf32>
    %253 = tpu.matmul %247, %250, %cst_100 {dimension_numbers = #tpu.dot_dimension_numbers<[1], [0], [0], [1], [0, 0, 1, 1], [], []>} : vector<8x8xbf16>, vector<8x8xbf16>, vector<8x8xf32> -> vector<8x8xf32>
    %cst_101 = arith.constant dense<0xFF800000> : vector<8xf32>
    %254 = vector.multi_reduction <maximumf>, %253, %cst_101 [1] : vector<8x8xf32> to vector<8xf32>
    %255 = vector.shape_cast %254 : vector<8xf32> to vector<8x1xf32>
    %256 = vector.broadcast %255 : vector<8x1xf32> to vector<8x8xf32>
    %257 = arith.subf %253, %256 : vector<8x8xf32>
    %258 = math.exp %257 : vector<8x8xf32>
    %cst_102 = arith.constant dense<0.000000e+00> : vector<8xf32>
    %259 = vector.multi_reduction <add>, %258, %cst_102 [1] : vector<8x8xf32> to vector<8xf32>
    %260 = vector.shape_cast %259 : vector<8xf32> to vector<8x1xf32>
    %261 = tpu.reciprocal %260 : vector<8x1xf32> -> vector<8x1xf32>
    %262 = vector.broadcast %261 : vector<8x1xf32> to vector<8x8xf32>
    %263 = arith.mulf %258, %262 : vector<8x8xf32>
    %264 = arith.truncf %263 : vector<8x8xf32> to vector<8x8xbf16>
    %cst_103 = arith.constant dense<0.000000e+00> : vector<8x8xf32>
    %265 = tpu.matmul %264, %252, %cst_103 {dimension_numbers = #tpu.dot_dimension_numbers<[1], [0], [0], [1], [0, 0, 1, 1], [], []>} : vector<8x8xbf16>, vector<8x8xbf16>, vector<8x8xf32> -> vector<8x8xf32>
    %c0_104 = arith.constant 0 : index
    %c16_105 = arith.constant 16 : index
    %266 = vector.load %arg11[%c0_104, %c16_105] : memref<8x32xf32, #tpu.memory_space<vmem>>, vector<8x8xf32>
    tpu.vector_store %arg11[%c0_104, %c16_105], %265 {strides = array<i32>} : memref<8x32xf32, #tpu.memory_space<vmem>>, vector<8x8xf32>,
    %267 = vector.extract_strided_slice %197 {offsets = [0, 24], sizes = [8, 8], strides = [1, 1]} : vector<8x96xf32> to vector<8x8xf32>
    %cst_106 = arith.constant 0.353553385 : f32
    %268 = vector.broadcast %cst_106 : f32 to vector<8x8xf32>
    %269 = arith.mulf %267, %268 : vector<8x8xf32>
    %270 = arith.truncf %269 : vector<8x8xf32> to vector<8x8xbf16>
    %271 = vector.extract_strided_slice %197 {offsets = [0, 56], sizes = [8, 8], strides = [1, 1]} : vector<8x96xf32> to vector<8x8xf32>
    %272 = tpu.transpose %271, [1, 0] : vector<8x8xf32> -> vector<8x8xf32>
    %273 = arith.truncf %272 : vector<8x8xf32> to vector<8x8xbf16>
    %274 = vector.extract_strided_slice %197 {offsets = [0, 88], sizes = [8, 8], strides = [1, 1]} : vector<8x96xf32> to vector<8x8xf32>
    %275 = arith.truncf %274 : vector<8x8xf32> to vector<8x8xbf16>
    %cst_107 = arith.constant dense<0.000000e+00> : vector<8x8xf32>
    %276 = tpu.matmul %270, %273, %cst_107 {dimension_numbers = #tpu.dot_dimension_numbers<[1], [0], [0], [1], [0, 0, 1, 1], [], []>} : vector<8x8xbf16>, vector<8x8xbf16>, vector<8x8xf32> -> vector<8x8xf32>
    %cst_108 = arith.constant dense<0xFF800000> : vector<8xf32>
    %277 = vector.multi_reduction <maximumf>, %276, %cst_108 [1] : vector<8x8xf32> to vector<8xf32>
    %278 = vector.shape_cast %277 : vector<8xf32> to vector<8x1xf32>
    %279 = vector.broadcast %278 : vector<8x1xf32> to vector<8x8xf32>
    %280 = arith.subf %276, %279 : vector<8x8xf32>
    %281 = math.exp %280 : vector<8x8xf32>
    %cst_109 = arith.constant dense<0.000000e+00> : vector<8xf32>
    %282 = vector.multi_reduction <add>, %281, %cst_109 [1] : vector<8x8xf32> to vector<8xf32>
    %283 = vector.shape_cast %282 : vector<8xf32> to vector<8x1xf32>
    %284 = tpu.reciprocal %283 : vector<8x1xf32> -> vector<8x1xf32>
    %285 = vector.broadcast %284 : vector<8x1xf32> to vector<8x8xf32>
    %286 = arith.mulf %281, %285 : vector<8x8xf32>
    %287 = arith.truncf %286 : vector<8x8xf32> to vector<8x8xbf16>
    %cst_110 = arith.constant dense<0.000000e+00> : vector<8x8xf32>
    %288 = tpu.matmul %287, %275, %cst_110 {dimension_numbers = #tpu.dot_dimension_numbers<[1], [0], [0], [1], [0, 0, 1, 1], [], []>} : vector<8x8xbf16>, vector<8x8xbf16>, vector<8x8xf32> -> vector<8x8xf32>
    %c0_111 = arith.constant 0 : index
    %c24_112 = arith.constant 24 : index
    %289 = vector.load %arg11[%c0_111, %c24_112] : memref<8x32xf32, #tpu.memory_space<vmem>>, vector<8x8xf32>
    tpu.vector_store %arg11[%c0_111, %c24_112], %288 {strides = array<i32>} : memref<8x32xf32, #tpu.memory_space<vmem>>, vector<8x8xf32>,
    %c0_113 = arith.constant 0 : index
    %c0_114 = arith.constant 0 : index
    %290 = vector.load %arg11[%c0_113, %c0_114] : memref<8x32xf32, #tpu.memory_space<vmem>>, vector<8x32xf32>
    %291 = arith.truncf %290 : vector<8x32xf32> to vector<8x32xbf16>
    %c1_115 = arith.constant 1 : index
    %c0_116 = arith.constant 0 : index
    %c0_117 = arith.constant 0 : index
    %292 = vector.load %arg7[%c1_115, %c0_116, %c0_117] : memref<2x32x32xbf16, #tpu.memory_space<vmem>>, vector<1x32x32xbf16>
    %293 = vector.shape_cast %292 : vector<1x32x32xbf16> to vector<32x32xbf16>
    %cst_118 = arith.constant dense<0.000000e+00> : vector<8x32xf32>
    %294 = tpu.matmul %291, %293, %cst_118 {dimension_numbers = #tpu.dot_dimension_numbers<[1], [0], [0], [1], [0, 0, 1, 1], [], []>} : vector<8x32xbf16>, vector<32x32xbf16>, vector<8x32xf32> -> vector<8x32xf32>
    %295 = vector.broadcast %185 : vector<1x32xf32> to vector<8x32xf32>
    %296 = arith.addf %294, %295 : vector<8x32xf32>
    %297 = arith.addf %183, %296 : vector<8x32xf32>
    %cst_119 = arith.constant dense<0.000000e+00> : vector<8xf32>
    %298 = vector.multi_reduction <add>, %297, %cst_119 [1] : vector<8x32xf32> to vector<8xf32>
    %299 = vector.shape_cast %298 : vector<8xf32> to vector<8x1xf32>
    %cst_120 = arith.constant 3.200000e+01 : f32
    %300 = vector.broadcast %cst_120 : f32 to vector<8x1xf32>
    %301 = arith.divf %299, %300 : vector<8x1xf32>
    %302 = vector.broadcast %301 : vector<8x1xf32> to vector<8x32xf32>
    %303 = arith.subf %297, %302 : vector<8x32xf32>
    %304 = arith.mulf %303, %303 : vector<8x32xf32>
    %cst_121 = arith.constant dense<0.000000e+00> : vector<8xf32>
    %305 = vector.multi_reduction <add>, %304, %cst_121 [1] : vector<8x32xf32> to vector<8xf32>
    %306 = vector.shape_cast %305 : vector<8xf32> to vector<8x1xf32>
    %cst_122 = arith.constant 3.200000e+01 : f32
    %307 = vector.broadcast %cst_122 : f32 to vector<8x1xf32>
    %308 = arith.divf %306, %307 : vector<8x1xf32>
    %309 = vector.broadcast %301 : vector<8x1xf32> to vector<8x32xf32>
    %310 = arith.subf %297, %309 : vector<8x32xf32>
    %cst_123 = arith.constant 9.99999974E-6 : f32
    %311 = vector.broadcast %cst_123 : f32 to vector<8x1xf32>
    %312 = arith.addf %308, %311 : vector<8x1xf32>
    %313 = math.rsqrt %312 : vector<8x1xf32>
    %314 = vector.broadcast %313 : vector<8x1xf32> to vector<8x32xf32>
    %315 = arith.mulf %310, %314 : vector<8x32xf32>
    %316 = vector.broadcast %188 : vector<1x32xf32> to vector<8x32xf32>
    %317 = arith.mulf %315, %316 : vector<8x32xf32>
    %318 = vector.broadcast %189 : vector<1x32xf32> to vector<8x32xf32>
    %319 = arith.addf %317, %318 : vector<8x32xf32>
    %320 = arith.truncf %319 : vector<8x32xf32> to vector<8x32xbf16>
    %c1_124 = arith.constant 1 : index
    %c0_125 = arith.constant 0 : index
    %c0_126 = arith.constant 0 : index
    %321 = vector.load %arg8[%c1_124, %c0_125, %c0_126] : memref<2x32x128xbf16, #tpu.memory_space<vmem>>, vector<1x32x128xbf16>
    %322 = vector.shape_cast %321 : vector<1x32x128xbf16> to vector<32x128xbf16>
    %cst_127 = arith.constant dense<0.000000e+00> : vector<8x128xf32>
    %323 = tpu.matmul %320, %322, %cst_127 {dimension_numbers = #tpu.dot_dimension_numbers<[1], [0], [0], [1], [0, 0, 1, 1], [], []>} : vector<8x32xbf16>, vector<32x128xbf16>, vector<8x128xf32> -> vector<8x128xf32>
    %324 = vector.broadcast %186 : vector<1x128xf32> to vector<8x128xf32>
    %325 = arith.addf %323, %324 : vector<8x128xf32>
    %cst_128 = arith.constant 0.000000e+00 : f32
    %326 = vector.broadcast %cst_128 : f32 to vector<8x128xf32>
    %327 = arith.maximumf %325, %326 : vector<8x128xf32>
    %328 = arith.truncf %327 : vector<8x128xf32> to vector<8x128xbf16>
    %c1_129 = arith.constant 1 : index
    %c0_130 = arith.constant 0 : index
    %c0_131 = arith.constant 0 : index
    %329 = vector.load %arg9[%c1_129, %c0_130, %c0_131] : memref<2x128x32xbf16, #tpu.memory_space<vmem>>, vector<1x128x32xbf16>
    %330 = vector.shape_cast %329 : vector<1x128x32xbf16> to vector<128x32xbf16>
    %cst_132 = arith.constant dense<0.000000e+00> : vector<8x32xf32>
    %331 = tpu.matmul %328, %330, %cst_132 {dimension_numbers = #tpu.dot_dimension_numbers<[1], [0], [0], [1], [0, 0, 1, 1], [], []>} : vector<8x128xbf16>, vector<128x32xbf16>, vector<8x32xf32> -> vector<8x32xf32>
    %332 = vector.broadcast %187 : vector<1x32xf32> to vector<8x32xf32>
    %333 = arith.addf %331, %332 : vector<8x32xf32>
    %334 = arith.addf %319, %333 : vector<8x32xf32>
    %cst_133 = arith.constant dense<0.000000e+00> : vector<8xf32>
    %335 = vector.multi_reduction <add>, %334, %cst_133 [1] : vector<8x32xf32> to vector<8xf32>
    %336 = vector.shape_cast %335 : vector<8xf32> to vector<8x1xf32>
    %cst_134 = arith.constant 3.200000e+01 : f32
    %337 = vector.broadcast %cst_134 : f32 to vector<8x1xf32>
    %338 = arith.divf %336, %337 : vector<8x1xf32>
    %339 = vector.broadcast %338 : vector<8x1xf32> to vector<8x32xf32>
    %340 = arith.subf %334, %339 : vector<8x32xf32>
    %341 = arith.mulf %340, %340 : vector<8x32xf32>
    %cst_135 = arith.constant dense<0.000000e+00> : vector<8xf32>
    %342 = vector.multi_reduction <add>, %341, %cst_135 [1] : vector<8x32xf32> to vector<8xf32>
    %343 = vector.shape_cast %342 : vector<8xf32> to vector<8x1xf32>
    %cst_136 = arith.constant 3.200000e+01 : f32
    %344 = vector.broadcast %cst_136 : f32 to vector<8x1xf32>
    %345 = arith.divf %343, %344 : vector<8x1xf32>
    %346 = vector.broadcast %338 : vector<8x1xf32> to vector<8x32xf32>
    %347 = arith.subf %334, %346 : vector<8x32xf32>
    %cst_137 = arith.constant 9.99999974E-6 : f32
    %348 = vector.broadcast %cst_137 : f32 to vector<8x1xf32>
    %349 = arith.addf %345, %348 : vector<8x1xf32>
    %350 = math.rsqrt %349 : vector<8x1xf32>
    %351 = vector.broadcast %350 : vector<8x1xf32> to vector<8x32xf32>
    %352 = arith.mulf %347, %351 : vector<8x32xf32>
    %353 = vector.broadcast %190 : vector<1x32xf32> to vector<8x32xf32>
    %354 = arith.mulf %352, %353 : vector<8x32xf32>
    %355 = vector.broadcast %191 : vector<1x32xf32> to vector<8x32xf32>
    %356 = arith.addf %354, %355 : vector<8x32xf32>
    %357 = vector.extract_strided_slice %356 {offsets = [0, 0], sizes = [1, 32], strides = [1, 1]} : vector<8x32xf32> to vector<1x32xf32>
    %358 = arith.truncf %357 : vector<1x32xf32> to vector<1x32xbf16>
    %c0_138 = arith.constant 0 : index
    %c0_139 = arith.constant 0 : index
    %359 = vector.load %arg5[%c0_138, %c0_139] : memref<32x128xbf16, #tpu.memory_space<vmem>>, vector<32x128xbf16>
    %cst_140 = arith.constant dense<0.000000e+00> : vector<1x128xf32>
    %360 = tpu.matmul %358, %359, %cst_140 {dimension_numbers = #tpu.dot_dimension_numbers<[1], [0], [0], [1], [0, 0, 1, 1], [], []>} : vector<1x32xbf16>, vector<32x128xbf16>, vector<1x128xf32> -> vector<1x128xf32>
    %361 = arith.addf %360, %1 : vector<1x128xf32>
    %cst_141 = arith.constant dense<0xFF800000> : vector<1xf32>
    %362 = vector.multi_reduction <maximumf>, %361, %cst_141 [1] : vector<1x128xf32> to vector<1xf32>
    %363 = vector.shape_cast %362 : vector<1xf32> to vector<1x1xf32>
    %364 = vector.broadcast %363 : vector<1x1xf32> to vector<1x128xf32>
    %365 = arith.subf %361, %364 : vector<1x128xf32>
    %366 = math.exp %365 : vector<1x128xf32>
    %cst_142 = arith.constant dense<0.000000e+00> : vector<1xf32>
    %367 = vector.multi_reduction <add>, %366, %cst_142 [1] : vector<1x128xf32> to vector<1xf32>
    %368 = vector.shape_cast %367 : vector<1xf32> to vector<1x1xf32>
    %369 = tpu.reciprocal %368 : vector<1x1xf32> -> vector<1x1xf32>
    %370 = vector.broadcast %369 : vector<1x1xf32> to vector<1x128xf32>
    %371 = arith.mulf %366, %370 : vector<1x128xf32>
    %372 = vector.shape_cast %371 : vector<1x128xf32> to vector<1x128xf32>
    %373 = vector.broadcast %372 : vector<1x128xf32> to vector<8x128xf32>
    %c0_143 = arith.constant 0 : index
    %c0_144 = arith.constant 0 : index
    %c0_145 = arith.constant 0 : index
    %374 = vector.load %arg10[%c0_143, %c0_144, %c0_145] : memref<1x8x128xf32, #tpu.memory_space<vmem>>, vector<1x8x128xf32>
    %375 = vector.shape_cast %374 : vector<1x8x128xf32> to vector<8x128xf32>
    %376 = vector.shape_cast %373 : vector<8x128xf32> to vector<1x8x128xf32>
    tpu.vector_store %arg10[%c0_143, %c0_144, %c0_145], %376 {strides = array<i32>} : memref<1x8x128xf32, #tpu.memory_space<vmem>>, vector<1x8x128xf32>,
    return
  }
  func.func @transform_0(%arg0: i32) -> (i32, i32, i32) {
    %c0_i32 = arith.constant 0 : i32
    %c0_i32_0 = arith.constant 0 : i32
    %c0_i32_1 = arith.constant 0 : i32
    return %arg0, %c0_i32, %c0_i32_0 : i32, i32, i32
  }
  func.func @transform_1(%arg0: i32) -> (i32, i32) {
    %c0_i32 = arith.constant 0 : i32
    %c0_i32_0 = arith.constant 0 : i32
    %c0_i32_1 = arith.constant 0 : i32
    return %c0_i32, %c0_i32_0 : i32, i32
  }
  func.func @transform_2(%arg0: i32) -> (i32, i32) {
    %c0_i32 = arith.constant 0 : i32
    %c0_i32_0 = arith.constant 0 : i32
    %c0_i32_1 = arith.constant 0 : i32
    return %c0_i32, %c0_i32_0 : i32, i32
  }
  func.func @transform_3(%arg0: i32) -> (i32, i32) {
    %c0_i32 = arith.constant 0 : i32
    %c0_i32_0 = arith.constant 0 : i32
    %c0_i32_1 = arith.constant 0 : i32
    return %c0_i32, %c0_i32_0 : i32, i32
  }
  func.func @transform_4(%arg0: i32) -> (i32, i32) {
    %c0_i32 = arith.constant 0 : i32
    %c0_i32_0 = arith.constant 0 : i32
    %c0_i32_1 = arith.constant 0 : i32
    return %c0_i32, %c0_i32_0 : i32, i32
  }
  func.func @transform_5(%arg0: i32) -> (i32, i32, i32) {
    %c0_i32 = arith.constant 0 : i32
    %c0_i32_0 = arith.constant 0 : i32
    %c0_i32_1 = arith.constant 0 : i32
    %c0_i32_2 = arith.constant 0 : i32
    return %c0_i32, %c0_i32_0, %c0_i32_1 : i32, i32, i32
  }
  func.func @transform_6(%arg0: i32) -> (i32, i32, i32) {
    %c0_i32 = arith.constant 0 : i32
    %c0_i32_0 = arith.constant 0 : i32
    %c0_i32_1 = arith.constant 0 : i32
    %c0_i32_2 = arith.constant 0 : i32
    return %c0_i32, %c0_i32_0, %c0_i32_1 : i32, i32, i32
  }
  func.func @transform_7(%arg0: i32) -> (i32, i32, i32) {
    %c0_i32 = arith.constant 0 : i32
    %c0_i32_0 = arith.constant 0 : i32
    %c0_i32_1 = arith.constant 0 : i32
    %c0_i32_2 = arith.constant 0 : i32
    return %c0_i32, %c0_i32_0, %c0_i32_1 : i32, i32, i32
  }
  func.func @transform_8(%arg0: i32) -> (i32, i32, i32) {
    %c0_i32 = arith.constant 0 : i32
    %c0_i32_0 = arith.constant 0 : i32
    %c0_i32_1 = arith.constant 0 : i32
    %c0_i32_2 = arith.constant 0 : i32
    return %c0_i32, %c0_i32_0, %c0_i32_1 : i32, i32, i32
  }
  func.func @transform_9(%arg0: i32) -> (i32, i32, i32) {
    %c0_i32 = arith.constant 0 : i32
    %c0_i32_0 = arith.constant 0 : i32
    %c0_i32_1 = arith.constant 0 : i32
    return %arg0, %c0_i32, %c0_i32_0 : i32, i32, i32
  }
}

</mosaic_0001>

<bundles_post_ra>
// kernel: transformer_forward.1
= control target key start
LH: loop header
LB: loop body
LE: loop exit
PB: predicated region body
PF: predicated region fallthrough
CT: control target
= control target key end

     0   :  { %s2996_s30 = smov 0   ;;  %s3396_s0 = inlined_call_operand.vmem [shape: f32[2,8,2], index: 0, kind: input, shape index: {}]   ;;  %s3397_s1 = inlined_call_operand.vmem [shape: f32[8,32], index: 1, kind: input, shape index: {}]   ;;  %s3398_s2 = inlined_call_operand.vmem [shape: f32[24,128], index: 2, kind: input, shape index: {}]   ;;  %s3399_s3 = inlined_call_operand.vmem [shape: bf16[2,32], index: 3, kind: input, shape index: {}]   ;;  %s3400_s4 = inlined_call_operand.vmem [shape: bf16[32,128], index: 4, kind: input, shape index: {}]   ;;  %s3401_s5 = inlined_call_operand.vmem [shape: bf16[2,32,96], index: 5, kind: input, shape index: {}]   ;;  %s3402_s6 = inlined_call_operand.vmem [shape: bf16[2,32,32], index: 6, kind: input, shape index: {}]   ;;  %s3403_s7 = inlined_call_operand.vmem [shape: bf16[2,32,128], index: 7, kind: input, shape index: {}]   ;;  %s3404_s8 = inlined_call_operand.vmem [shape: bf16[2,128,32], index: 8, kind: input, shape index: {}]   ;;  %s3405_s9 = inlined_call_operand.vmem [shape: f32[2,8,128], index: 9, kind: output, shape index: {}]  }
   0x1 LB: > { %s2438_s10 = sadd.s32 4294967295, %s2928_s30   ;;  %p2442_p0 = scmp.ge.s32.totalorder %s2928_s30, 1  ;;  %s2928_s30 = sphi %s2996_s30, %s19_s30  }
   0x2   : > { %p286_p1 = scmp.lt.s32.totalorder %s2928_s30, 3 }
   0x4   : > { %p287_p2 = pnand %p2442_p0, %p286_p1 }
   0x5   : > { %p320_p3 = scmp.lt.s32.totalorder (!%p287_p2), %s2438_s10, 1  ;;  %s2932_s27 = smov (!%p287_p2), 80  }
   0x6   : > { %290 = sbr.rel (%p287_p2) target bundleno = 6321 (0x18b1), region = 56  ;;  %s2933_s28 = smov (!%p287_p2), 96  }
   0x7   : > { %s2934_s29 = smov (!%p287_p2), 72   ;;  %s2935_s11 = smov (!%p287_p2), 88  }
   0x8   : > { %s2936_s12 = smov (!%p287_p2), 112   ;;  %s2937_s14 = smov (!%p287_p2), 120  }
   0x9   : > { %s2938_s15 = smov (!%p287_p2), 104   ;;  %s2940_s17 = smov (!%p287_p2), 56  }
   0xa   : > { %s2941_s18 = smov (!%p287_p2), 48   ;;  %s2942_s19 = smov (!%p287_p2), 40  }
   0xb   : > { %v333_v0 = vld [vmem:[%s3399_s3] sm:$0x1]  ;;  %vm342_vm0 = vcmask 1040384   ;;  %v2930_v1 = vmov 0.0   ;;  %vm2931_vm1 = vmmov 0   ;;  %s3415_s10 = smov (!%p320_p3, %s2438_s10), 1 }
   0xc   : > { %2619 = vmatprep.subr.bf16.mxu0 %v2930_v1  ;;  %v344_v2 = vsel %vm342_vm0, %v333_v0, 0  ;;  %2621 = vmatprep.mubr.msk.bf16.mxu0 %vm2931_vm1, %v2930_v1  ;;  %s3406_s13 = sshll.u32 %s3415_s10, 3  ;;  %vm338_vm2 = vcmask 15360   ;;  %v2848_v5 = vld [vmem:[%s3401_s5 + $0x8] sm:$0xff]   ;;  %v2849_v6 = vld [vmem:[%s3401_s5] sm:$0xff]   ;;  %vm417_vm3 = vcmask 261120  }
   0xd   : > { %2620 = vmatpush3.bf16.msra.mxu0 %v344_v2  ;;  %2639 = vmatprep.subr.bf16.mxu1 %v2930_v1  ;;  %s323_s16 = scalar_lea.vmem %s3396_s0, %s3406_s13  ;;  %v2445_v7 = vld [vmem:[%s3398_s2] ss:$0 sm:$0xff]  ;;  %v2447_v16 = vld [vmem:[%s3398_s2 + $0x2] ss:$0 sm:$0xff]  ;;  %vm505_vm4 = vcmask 1043456   ;;  %vm501_vm5 = vcmask 64512  }
   0xe   : > { %2625 = vmatprep.subr.bf16.mxu0 %v2930_v1  ;;  %2641 = vmatprep.mubr.msk.bf16.mxu1 %vm2931_vm1, %v2930_v1  ;;  %v331_v3 = vld [vmem:[%s323_s16] sm:$0xff]  ;;  %s2939_s16 = smov 64   ;;  %s3409_s20 = smov 8   ;;  %vm760_vm6 = vcmask 130112   ;;  %vm910_vm7 = vcmask 195712   ;;  %vm1060_vm8 = vcmask 261312  }
   0xf   : > { %v332_v4 = vpack.c.bf16 %v331_v3, %v331_v3  ;;  %v386_v9 = vld [vmem:[%s3397_s1] sm:$0xff]  ;;  %s3408_s25 = smov 16   ;;  %s3407_s26 = smov 24  }
  0x11   : > { %2622 = vmatmul.mubr.msk.bf16.vlgmr.msra.gmra.mxu0 %vm338_vm2, %v332_v4 }
  0x12   : > { %2629 = vmatprep.mubr.msk.bf16.mxu0 %vm2931_vm1, %v2930_v1  ;;  %2626 = vmatpush3.bf16.msra.mxu0 %v2848_v5 }
  0x13   : > { %2627 = vmatprep.subr.bf16.mxu0 %v2930_v1 }
  0x16   : > { %2628 = vmatpush3.bf16.msra.mxu0 %v2849_v6 }
  0x17   : > { %2633 = vmatprep.subr.bf16.mxu0 %v2930_v1 }
  0xd1   : > { %v380_v8 = vpop.f32.mrf.mxu0 }
  0xd2   : > { %v381_v10 = vadd.f32 %v2445_v7, %v380_v8 }
  0xd3   : > { %v2623_v11 = vpop.f32.mrf.mxu0 }
  0xd4   : > { %v3039_v12 = vadd.f32 %v386_v9, %v381_v10 }
  0xd5   : > { %v383_v13 = vpop.f32.mrf.mxu0 }
  0xd6   : > { %v396_v14 = vpack.c.bf16 %v3039_v12, %v3039_v12 }
  0xd7   : > { %v2624_v15 = vpop.f32.mrf.mxu0 }
  0xd8   : > { %2630 = vmatmul.mubr.msk.bf16.vlgmr.msra.gmra.mxu0 %vm417_vm3, %v396_v14 }
  0xd9   : > { %2635 = vmatprep.mubr.msk.bf16.mxu0 %vm2931_vm1, %v2930_v1 }
 0x198   : > { %v455_v17 = vpop.f32.mrf.mxu0 }
 0x199   : > { %v3049_v18 = vadd.f32 %v2447_v16, %v455_v17 }
 0x19a   : > { %v2631_v19 = vpop.f32.mrf.mxu0 }
 0x19b   : > { %762 = vrot.lane.b32.xlu1 %v3049_v18, %s2932_s27  ;;  %464 = vrot.lane.b32.xlu0 %v3049_v18, %s2933_s28  ;;  %v461_v21 = vmul.f32 0.35355338, %v3049_v18  ;;  %v500_v17 = vpack.c.bf16 %v3049_v18, %v3049_v18 }
 0x19c   : > { %v458_v20 = vpop.f32.mrf.mxu0 }
 0x19d   : > { %v462_v23 = vpack.c.bf16 %v461_v21, %v461_v21 }
 0x19e   : > { %v2632_v22 = vpop.f32.mrf.mxu0 }
 0x19f   : > { %912 = vrot.lane.b32.xlu1 %v3049_v18, %s2934_s29  ;;  %611 = vrot.lane.b32.xlu0 %v3049_v18, %s2935_s11 }
 0x1a3   : > { %798 = vrot.lane.b32.xlu1 %v462_v23, %s2936_s12  ;;  %648 = vrot.lane.b32.xlu0 %v462_v23, %s2937_s14 }
 0x1a7   : > { %948 = vrot.lane.b32.xlu1 %v462_v23, %s2938_s15 }
 0x20d   : > { %v763_v24 = vpop.permute.xlu1 %762  ;;  %v465_v25 = vpop.permute.xlu0 %464 }
 0x20e   : > { %765 = vxpose.xlu1.b32.start.end [1/1] (short) (narrow) %v763_v24, 8 }
 0x211   : > { %v612_v26 = vpop.permute.xlu0 %611  ;;  %v913_v28 = vpop.permute.xlu1 %912 }
 0x212   : > { %v2841_v27 = vpack.i.bf16 %v612_v26, %v465_v25 }
 0x214   : > { %2842 = vxpose.xlu0.b32.start.end [1/1] (short) (narrow) %v2841_v27, 8 }
 0x215   : > { %v649_v29 = vpop.permute.xlu0 %648  ;;  %v799_v30 = vpop.permute.xlu1 %798 }
 0x218   : > { %915 = vxpose.xlu0.b32.start.end [1/1] (short) (narrow) %v913_v28, 8 }
 0x219   : > { %v949_v35 = vpop.permute.xlu1 %948 }
 0x28a   : > { %v781_v38 = vpop.trf.xlu1 }
 0x28b   : > { %v797_v40 = vpack.c.bf16 %v781_v38, %v781_v38 }
 0x28d   : > { %v804_v41 = vsel %vm505_vm4, %v797_v40, 0 }
 0x290   : > { %v2843_v31 = vpop.trf.xlu0 }
 0x291   : > { %v2847_v32 = vunpack.i.h.bf16 %v2843_v31  ;;  %v2844_v33 = vunpack.i.l.bf16 %v2843_v31 }
 0x293   : > { %v499_v34 = vpack.c.bf16 %v2844_v33, %v2844_v33  ;;  %v646_v37 = vpack.c.bf16 %v2847_v32, %v2847_v32 }
 0x294   : > { %v931_v42 = vpop.trf.xlu0 }
 0x295   : > { %v507_v36 = vsel %vm505_vm4, %v499_v34, 0  ;;  %v654_v39 = vsel %vm505_vm4, %v646_v37, 0  ;;  %v947_v43 = vpack.c.bf16 %v931_v42, %v931_v42 }
 0x296   : > { %2634 = vmatpush3.bf16.msra.mxu0 %v507_v36 }
 0x297   : > { %2645 = vmatprep.subr.bf16.mxu0 %v2930_v1  ;;  %v954_v44 = vsel %vm505_vm4, %v947_v43, 0 }
 0x299   : > { %2636 = vmatmul.mubr.msk.bf16.vlgmr.msra.gmra.mxu0 %vm501_vm5, %v462_v23 }
 0x29a   : > { %2646 = vmatpush3.bf16.msra.mxu0 %v654_v39  ;;  %2647 = vmatprep.mubr.msk.bf16.mxu0 %vm2931_vm1, %v2930_v1 }
 0x29b   : > { %2657 = vmatprep.subr.bf16.mxu0 %v2930_v1 }
 0x2a1   : > { %2648 = vmatmul.mubr.msk.bf16.vlgmr.msra.gmra.mxu0 %vm501_vm5, %v649_v29 }
 0x2a2   : > { %2658 = vmatpush3.bf16.msra.mxu0 %v804_v41  ;;  %2659 = vmatprep.mubr.msk.bf16.mxu0 %vm2931_vm1, %v2930_v1 }
 0x2a3   : > { %2669 = vmatprep.subr.bf16.mxu0 %v2930_v1 }
 0x2a9   : > { %2660 = vmatmul.mubr.msk.bf16.vlgmr.msra.gmra.mxu0 %vm501_vm5, %v799_v30 }
 0x2aa   : > { %2670 = vmatpush3.bf16.msra.mxu0 %v954_v44  ;;  %2671 = vmatprep.mubr.msk.bf16.mxu0 %vm2931_vm1, %v2930_v1 }
 0x2ab   : > { %2681 = vmatprep.subr.bf16.mxu0 %v2930_v1 }
 0x2b1   : > { %2672 = vmatmul.mubr.msk.bf16.vlgmr.msra.gmra.mxu0 %vm501_vm5, %v949_v35 }
 0x2b2   : > { %2685 = vmatprep.mubr.msk.bf16.mxu0 %vm2931_vm1, %v2930_v1 }
 0x359   : > { %v543_v45 = vpop.f32.mrf.mxu0 }
 0x35a   : > { %v549_v46 = vsel %vm501_vm5, %v543_v45, -inf }
 0x35b   : > { %550 = vmax.xlane.f32.xlu0 %v549_v46  ;;  %v2637_v47 = vpop.f32.mrf.mxu0 }
 0x35d   : > { %v546_v48 = vpop.f32.mrf.mxu0 }
 0x35f   : > { %v2638_v49 = vpop.f32.mrf.mxu0 }
 0x361   : > { %v690_v50 = vpop.f32.mrf.mxu0 }
 0x362   : > { %v696_v51 = vsel %vm501_vm5, %v690_v50, -inf }
 0x363   : > { %697 = vmax.xlane.f32.xlu1 %v696_v51  ;;  %v2649_v52 = vpop.f32.mrf.mxu0 }
 0x365   : > { %v693_v53 = vpop.f32.mrf.mxu0 }
 0x367   : > { %v2650_v54 = vpop.f32.mrf.mxu0 }
 0x369   : > { %v840_v55 = vpop.f32.mrf.mxu0 }
 0x36a   : > { %v846_v56 = vsel %vm501_vm5, %v840_v55, -inf }
 0x36b   : > { %847 = vmax.xlane.f32.xlu0 %v846_v56  ;;  %v2661_v57 = vpop.f32.mrf.mxu0  ;;  %v2850_v56 = vld [vmem:[%s3402_s6 + $0x8] sm:$0xff]  }
 0x36c   : > { %2682 = vmatpush3.bf16.msra.mxu0 %v2850_v56  ;;  %v2851_v57 = vld [vmem:[%s3402_s6] sm:$0xff]  }
 0x36d   : > { %v843_v58 = vpop.f32.mrf.mxu0  ;;  %2683 = vmatprep.subr.bf16.mxu0 %v2930_v1 }
 0x36f   : > { %v2662_v59 = vpop.f32.mrf.mxu0 }
 0x370   : > { %2684 = vmatpush3.bf16.msra.mxu0 %v2851_v57 }
 0x371   : > { %v990_v60 = vpop.f32.mrf.mxu0  ;;  %2697 = vmatprep.subr.bf16.mxu0 %v2930_v1 }
 0x372   : > { %v996_v61 = vsel %vm501_vm5, %v990_v60, -inf }
 0x373   : > { %997 = vmax.xlane.f32.xlu0 %v996_v61  ;;  %v2673_v62 = vpop.f32.mrf.mxu0 }
 0x375   : > { %v993_v63 = vpop.f32.mrf.mxu0 }
 0x377   : > { %v2674_v0 = vpop.f32.mrf.mxu0 }
 0x3e4   : > { %v551_v2 = vpop.xlane.xlu0 %550 }
 0x3e5   : > { %v552_v3 = vsub.f32 %v543_v45, %v551_v2 }
 0x3e7   : > { %v553_v4 = vmul.f32 1.442695, %v552_v3 }
 0x3e9   : > { %2878 = vpow2.f32 %v553_v4 }
 0x3ec   : > { %v698_v5 = vpop.xlane.xlu1 %697 }
 0x3ed   : > { %v699_v6 = vsub.f32 %v690_v50, %v698_v5 }
 0x3ef   : > { %v700_v7 = vmul.f32 1.442695, %v699_v6 }
 0x3f1   : > { %2880 = vpow2.f32 %v700_v7 }
 0x3f4   : > { %v848_v10 = vpop.xlane.xlu0 %847 }
 0x3f5   : > { %v849_v21 = vsub.f32 %v840_v55, %v848_v10 }
 0x3f6   : > { %v2879_v8 = vpop.eup %2878 }
 0x3f7   : > { %v555_v9 = vsel %vm501_vm5, %v2879_v8, 0.0  ;;  %v850_v22 = vmul.f32 1.442695, %v849_v21 }
 0x3f8   : > { %556 = vadd.xlane.f32.xlu1 %v555_v9 }
 0x3fc   : > { %v998_v11 = vpop.xlane.xlu0 %997 }
 0x3fd   : > { %v999_v13 = vsub.f32 %v990_v60, %v998_v11 }
 0x3fe   : > { %v2881_v14 = vpop.eup %2880 }
 0x3ff   : > { %v1000_v15 = vmul.f32 1.442695, %v999_v13  ;;  %v702_v16 = vsel %vm501_vm5, %v2881_v14, 0.0 }
 0x400   : > { %703 = vadd.xlane.f32.xlu0 %v702_v16 }
 0x401   : > { %2882 = vpow2.f32 %v1000_v15 }
 0x402   : > { %2884 = vpow2.f32 %v850_v22 }
 0x409   : > { %562 = vrot.lane.b32.xlu1 %v500_v17, %s2939_s16 }
 0x40e   : > { %v2883_v19 = vpop.eup %2882 }
 0x40f   : > { %v1002_v20 = vsel %vm501_vm5, %v2883_v19, 0.0  ;;  %v2885_v23 = vpop.eup %2884 }
 0x410   : > { %1003 = vadd.xlane.f32.xlu0 %v1002_v20  ;;  %v852_v24 = vsel %vm501_vm5, %v2885_v23, 0.0 }
 0x426   : > { %708 = vrot.lane.b32.xlu0 %v500_v17, %s2940_s17 }
 0x42d   : > { %853 = vadd.xlane.f32.xlu1 %v852_v24  ;;  %v2854_v24 = vld [vmem:[%s3404_s8 + $0x38] sm:$0xff]  }
 0x43e   : > { %858 = vrot.lane.b32.xlu1 %v500_v17, %s2941_s18 }
 0x442   : > { %1008 = vrot.lane.b32.xlu1 %v500_v17, %s2942_s19 }
 0x481   : > { %v557_v18 = vpop.xlane.xlu1 %556 }
 0x482   : > { %2886 = vrcp.f32 %v557_v18  ;;  %v2855_v18 = vld [vmem:[%s3404_s8 + $0x30] sm:$0xff]  }
 0x485   : > { %v563_v25 = vpop.permute.xlu1 %562 }
 0x486   : > { %v568_v26 = vsel %vm505_vm4, %v563_v25, 0  ;;  %v2856_v25 = vld [vmem:[%s3404_s8 + $0x28] sm:$0xff]  }
 0x487   : > { %2640 = vmatpush3.bf16.msra.mxu1 %v568_v26  ;;  %v2857_v26 = vld [vmem:[%s3404_s8 + $0x20] sm:$0xff]  }
 0x488   : > { %2651 = vmatprep.subr.bf16.mxu1 %v2930_v1 }
 0x489   : > { %v704_v27 = vpop.xlane.xlu0 %703 }
 0x48a   : > { %2888 = vrcp.f32 %v704_v27  ;;  %v2858_v27 = vld [vmem:[%s3404_s8 + $0x18] sm:$0xff]  }
 0x48f   : > { %v2887_v28 = vpop.eup %2886 }
 0x490   : > { %v559_v29 = vmul.f32 %v2887_v28, %v2879_v8  ;;  %v2459_v8 = vld [vmem:[%s3398_s2 + $0x3] ss:$0 sm:$0xff]  ;;  %v2859_v28 = vld [vmem:[%s3404_s8 + $0x10] sm:$0xff]  }
 0x492   : > { %v560_v30 = vpack.c.bf16 %v559_v29, %v559_v29 }
 0x494   : > { %2642 = vmatmul.mubr.msk.bf16.vlgmr.msra.gmra.mxu1 %vm501_vm5, %v560_v30 }
 0x495   : > { %2653 = vmatprep.mubr.msk.bf16.mxu1 %vm2931_vm1, %v2930_v1 }
 0x497   : > { %v2889_v31 = vpop.eup %2888 }
 0x498   : > { %v706_v33 = vmul.f32 %v2889_v31, %v2881_v14 }
 0x499   : > { %v1004_v32 = vpop.xlane.xlu0 %1003 }
 0x49a   : > { %v707_v36 = vpack.c.bf16 %v706_v33, %v706_v33  ;;  %v2463_v33 = vld [vmem:[%s3398_s2 + $0x6] ss:$0 sm:$0xff] }
 0x49d   : > { %v709_v34 = vpop.permute.xlu0 %708 }
 0x49e   : > { %v714_v35 = vsel %vm505_vm4, %v709_v34, 0 }
 0x49f   : > { %2652 = vmatpush3.bf16.msra.mxu1 %v714_v35  ;;  %v2464_v35 = vld [vmem:[%s3398_s2 + $0x7] ss:$0 sm:$0xff] }
 0x4a0   : > { %2663 = vmatprep.subr.bf16.mxu1 %v2930_v1 }
 0x4a2   : > { %2654 = vmatmul.mubr.msk.bf16.vlgmr.msra.gmra.mxu1 %vm501_vm5, %v707_v36 }
 0x4a3   : > { %2665 = vmatprep.mubr.msk.bf16.mxu1 %vm2931_vm1, %v2930_v1 }
 0x4b6   : > { %v854_v37 = vpop.xlane.xlu1 %853 }
 0x4b7   : > { %2890 = vrcp.f32 %v854_v37 }
 0x4b8   : > { %2892 = vrcp.f32 %v1004_v32 }
 0x4ba   : > { %v859_v38 = vpop.permute.xlu1 %858 }
 0x4bb   : > { %v864_v39 = vsel %vm505_vm4, %v859_v38, 0 }
 0x4bc   : > { %2664 = vmatpush3.bf16.msra.mxu1 %v864_v39  ;;  %v2860_v39 = vld [vmem:[%s3404_s8 + $0x8] sm:$0xff]  }
 0x4bd   : > { %2675 = vmatprep.subr.bf16.mxu1 %v2930_v1 }
 0x4be   : > { %v1009_v42 = vpop.permute.xlu1 %1008 }
 0x4bf   : > { %v1014_v45 = vsel %vm505_vm4, %v1009_v42, 0 }
 0x4c4   : > { %v2891_v40 = vpop.eup %2890 }
 0x4c5   : > { %v856_v41 = vmul.f32 %v2891_v40, %v2885_v23  ;;  %v2893_v44 = vpop.eup %2892  ;;  %v2852_v23 = vld [vmem:[%s3403_s7 + $0x8] sm:$0xff]   ;;  %v2861_v40 = vld [vmem:[%s3404_s8] sm:$0xff]  }
 0x4c6   : > { %v1006_v46 = vmul.f32 %v2893_v44, %v2883_v19 }
 0x4c7   : > { %v857_v43 = vpack.c.bf16 %v856_v41, %v856_v41  ;;  %v2465_v41 = vld [vmem:[%s3398_s2 + $0x4] ss:$0 sm:$0xff] }
 0x4c8   : > { %v1007_v47 = vpack.c.bf16 %v1006_v46, %v1006_v46 }
 0x4c9   : > { %2666 = vmatmul.mubr.msk.bf16.vlgmr.msra.gmra.mxu1 %vm501_vm5, %v857_v43 }
 0x4ca   : > { %2676 = vmatpush3.bf16.msra.mxu1 %v1014_v45  ;;  %2677 = vmatprep.mubr.msk.bf16.mxu1 %vm2931_vm1, %v2930_v1 }
 0x4cb   : > { %2689 = vmatprep.subr.bf16.mxu1 %v2930_v1 }
 0x4d1   : > { %2678 = vmatmul.mubr.msk.bf16.vlgmr.msra.gmra.mxu1 %vm501_vm5, %v1007_v47 }
 0x4d2   : > { %2693 = vmatprep.mubr.msk.bf16.mxu1 %vm2931_vm1, %v2930_v1  ;;  %2690 = vmatpush3.bf16.msra.mxu1 %v2852_v23 }
 0x4d3   : > { %2691 = vmatprep.subr.bf16.mxu1 %v2930_v1 }
 0x554   : > { %v604_v48 = vpop.f32.mrf.mxu1 }
 0x555   : > { %610 = vst.msk [vmem:[#allocation2] sm:$0xff] %vm501_vm5, %v604_v48 }
 0x556   : > { %v2643_v49 = vpop.f32.mrf.mxu1 }
 0x557   : > { %v2469_v49 = vld [vmem:[%s3398_s2 + $0x5] ss:$0 sm:$0xff] }
 0x558   : > { %v607_v50 = vpop.f32.mrf.mxu1 }
 0x55a   : > { %v2644_v51 = vpop.f32.mrf.mxu1 }
 0x562   : > { %v750_v52 = vpop.f32.mrf.mxu1 }
 0x563   : > { %757 = vrot.lane.b32.xlu0 %v750_v52, %s3409_s20 }
 0x564   : > { %v2655_v53 = vpop.f32.mrf.mxu1 }
 0x566   : > { %v753_v54 = vpop.f32.mrf.mxu1 }
 0x568   : > { %v2656_v55 = vpop.f32.mrf.mxu1 }
 0x589   : > { %v900_v58 = vpop.f32.mrf.mxu1 }
 0x58a   : > { %907 = vrot.lane.b32.xlu1 %v900_v58, %s3408_s25 }
 0x58b   : > { %v2667_v59 = vpop.f32.mrf.mxu1 }
 0x58d   : > { %v903_v60 = vpop.f32.mrf.mxu1 }
 0x58f   : > { %v2668_v61 = vpop.f32.mrf.mxu1 }
 0x591   : > { %v1050_v62 = vpop.f32.mrf.mxu1 }
 0x592   : > { %1057 = vrot.lane.b32.xlu0 %v1050_v62, %s3407_s26  ;;  %v2862_v62 = vld [vmem:[%s3401_s5 + $0x18] sm:$0xff]  }
 0x593   : > { %v2679_v63 = vpop.f32.mrf.mxu1 }
 0x594   : > { %v2863_v63 = vld [vmem:[%s3401_s5 + $0x10] sm:$0xff]  }
 0x595   : > { %v1053_v0 = vpop.f32.mrf.mxu1 }
 0x597   : > { %v2680_v2 = vpop.f32.mrf.mxu1 }
 0x5d5   : > { %v758_v3 = vpop.permute.xlu0 %757 }
 0x5d6   : > { %761 = vst.msk [vmem:[#allocation2] sm:$0xff] %vm760_vm6, %v758_v3 }
 0x5fc   : > { %v908_v4 = vpop.permute.xlu1 %907 }
 0x5fd   : > { %911 = vst.msk [vmem:[#allocation2] sm:$0xff] %vm910_vm7, %v908_v4 }
 0x604   : > { %v1058_v5 = vpop.permute.xlu0 %1057 }
 0x605   : > { %1061 = vst.msk [vmem:[#allocation2] sm:$0xff] %vm1060_vm8, %v1058_v5  ;;  %v2478_v5 = vld [vmem:[%s3398_s2 + $0x8] ss:$0 sm:$0xff] }
 0x60c   : > { %v1062_v6 = vld [vmem:[#allocation2] sm:$0xff] }
 0x60d   : > { %v1063_v7 = vpack.c.bf16 %v1062_v6, %v1062_v6 }
 0x60f   : > { %2686 = vmatmul.mubr.msk.bf16.vlgmr.msra.gmra.mxu0 %vm417_vm3, %v1063_v7  ;;  %v2479_v7 = vld [vmem:[%s3398_s2 + $0x9] ss:$0 sm:$0xff] }
 0x610   : > { %2713 = vmatprep.mubr.msk.bf16.mxu0 %vm2931_vm1, %v2930_v1  ;;  %2698 = vmatpush3.bf16.msra.mxu0 %v2854_v24 }
 0x611   : > { %2699 = vmatprep.subr.bf16.mxu0 %v2930_v1 }
 0x614   : > { %2700 = vmatpush3.bf16.msra.mxu0 %v2855_v18 }
 0x615   : > { %2701 = vmatprep.subr.bf16.mxu0 %v2930_v1 }
 0x618   : > { %2702 = vmatpush3.bf16.msra.mxu0 %v2856_v25 }
 0x619   : > { %2703 = vmatprep.subr.bf16.mxu0 %v2930_v1 }
 0x61c   : > { %2704 = vmatpush3.bf16.msra.mxu0 %v2857_v26 }
 0x61d   : > { %2705 = vmatprep.subr.bf16.mxu0 %v2930_v1 }
 0x620   : > { %2706 = vmatpush3.bf16.msra.mxu0 %v2858_v27 }
 0x621   : > { %2707 = vmatprep.subr.bf16.mxu0 %v2930_v1 }
 0x624   : > { %2708 = vmatpush3.bf16.msra.mxu0 %v2859_v28 }
 0x625   : > { %2709 = vmatprep.subr.bf16.mxu0 %v2930_v1 }
 0x628   : > { %2710 = vmatpush3.bf16.msra.mxu0 %v2860_v39 }
 0x629   : > { %2711 = vmatprep.subr.bf16.mxu0 %v2930_v1 }
 0x62c   : > { %2712 = vmatpush3.bf16.msra.mxu0 %v2861_v40 }
 0x62d   : > { %2743 = vmatprep.subr.bf16.mxu0 %v2930_v1 }
 0x6cf   : > { %v1121_v9 = vpop.f32.mrf.mxu0 }
 0x6d0   : > { %v1122_v10 = vadd.f32 %v2459_v8, %v1121_v9 }
 0x6d1   : > { %v2687_v11 = vpop.f32.mrf.mxu0 }
 0x6d2   : > { %v1127_v13 = vadd.f32 %v1122_v10, %v3039_v12  ;;  %v2853_v12 = vld [vmem:[%s3403_s7] sm:$0xff]   ;;  %v2484_v11 = vld [vmem:[%s3398_s2 + $0xa] ss:$0 sm:$0xff] }
 0x6d3   : > { %v1124_v14 = vpop.f32.mrf.mxu0  ;;  %2692 = vmatpush3.bf16.msra.mxu1 %v2853_v12 }
 0x6d4   : > { %v1128_v15 = vsel %vm417_vm3, %v1127_v13, 0.0  ;;  %2717 = vmatprep.subr.bf16.mxu1 %v2930_v1 }
 0x6d5   : > { %1129 = vadd.xlane.f32.xlu1 %v1128_v15  ;;  %v2688_v16 = vpop.f32.mrf.mxu0 }
 0x75e   : > { %v1130_v17 = vpop.xlane.xlu1 %1129 }
 0x75f   : > { %v1132_v19 = vmul.f32 0.03125, %v1130_v17 }
 0x761   : > { %v1133_v20 = vsub.f32 %v1127_v13, %v1132_v19 }
 0x763   : > { %v1134_v21 = vmul.f32 %v1133_v20, %v1133_v20 }
 0x765   : > { %v1135_v22 = vsel %vm417_vm3, %v1134_v21, 0.0 }
 0x766   : > { %1136 = vadd.xlane.f32.xlu0 %v1135_v22 }
 0x7ef   : > { %v1137_v29 = vpop.xlane.xlu0 %1136 }
 0x7f0   : > { %v1138_v30 = vmul.f32 0.03125, %v1137_v29 }
 0x7f2   : > { %v1139_v31 = vadd.f32 1e-05, %v1138_v30 }
 0x7f4   : > { %2894 = vrsqrt.f32 %v1139_v31 }
 0x801   : > { %v2895_v32 = vpop.eup %2894 }
 0x802   : > { %v1141_v34 = vmul.f32 %v2895_v32, %v1133_v20 }
 0x804   : > { %v1146_v36 = vmul.f32 %v2463_v33, %v1141_v34 }
 0x806   : > { %v1151_v37 = vadd.f32 %v2464_v35, %v1146_v36 }
 0x808   : > { %v1152_v38 = vpack.c.bf16 %v1151_v37, %v1151_v37 }
 0x80a   : > { %2694 = vmatmul.mubr.msk.bf16.vlgmr.msra.gmra.mxu1 %vm417_vm3, %v1152_v38 }
 0x80b   : > { %2721 = vmatprep.mubr.msk.bf16.mxu1 %vm2931_vm1, %v2930_v1  ;;  %2718 = vmatpush3.bf16.msra.mxu1 %v2862_v62 }
 0x80c   : > { %2719 = vmatprep.subr.bf16.mxu1 %v2930_v1 }
 0x80f   : > { %2720 = vmatpush3.bf16.msra.mxu1 %v2863_v63 }
 0x810   : > { %2725 = vmatprep.subr.bf16.mxu1 %v2930_v1 }
 0x8ca   : > { %v1210_v42 = vpop.f32.mrf.mxu1 }
 0x8cb   : > { %v1211_v43 = vadd.f32 %v2465_v41, %v1210_v42 }
 0x8cc   : > { %v2695_v44 = vpop.f32.mrf.mxu1 }
 0x8cd   : > { %v1216_v45 = vmax.f32 %v1211_v43, 0.0 }
 0x8ce   : > { %v1213_v46 = vpop.f32.mrf.mxu1 }
 0x8cf   : > { %v1217_v47 = vpack.c.bf16 %v1216_v45, %v1216_v45 }
 0x8d0   : > { %v2696_v48 = vpop.f32.mrf.mxu1 }
 0x8d1   : > { %2714 = vmatmul.mubr.bf16.vlgmr.msra.gmra.mxu0 %v1217_v47 }
 0x8d2   : > { %2745 = vmatprep.mubr.msk.bf16.mxu0 %vm2931_vm1, %v2930_v1 }
 0x991   : > { %v1320_v50 = vpop.f32.mrf.mxu0 }
 0x992   : > { %v1321_v51 = vadd.f32 %v2469_v49, %v1320_v50 }
 0x993   : > { %v2715_v52 = vpop.f32.mrf.mxu0 }
 0x994   : > { %v1326_v53 = vadd.f32 %v1321_v51, %v1151_v37 }
 0x995   : > { %v1323_v54 = vpop.f32.mrf.mxu0 }
 0x996   : > { %v1327_v55 = vsel %vm417_vm3, %v1326_v53, 0.0 }
 0x997   : > { %1328 = vadd.xlane.f32.xlu0 %v1327_v55  ;;  %v2716_v56 = vpop.f32.mrf.mxu0 }
 0xa20   : > { %v1329_v57 = vpop.xlane.xlu0 %1328 }
 0xa21   : > { %v1330_v58 = vmul.f32 0.03125, %v1329_v57 }
 0xa23   : > { %v1331_v59 = vsub.f32 %v1326_v53, %v1330_v58 }
 0xa25   : > { %v1332_v60 = vmul.f32 %v1331_v59, %v1331_v59 }
 0xa27   : > { %v1333_v61 = vsel %vm417_vm3, %v1332_v60, 0.0 }
 0xa28   : > { %1334 = vadd.xlane.f32.xlu1 %v1333_v61 }
 0xab1   : > { %v1335_v0 = vpop.xlane.xlu1 %1334 }
 0xab2   : > { %v1336_v2 = vmul.f32 0.03125, %v1335_v0 }
 0xab4   : > { %v1337_v3 = vadd.f32 1e-05, %v1336_v2 }
 0xab6   : > { %2896 = vrsqrt.f32 %v1337_v3 }
 0xac3   : > { %v2897_v4 = vpop.eup %2896 }
 0xac4   : > { %v1339_v6 = vmul.f32 %v2897_v4, %v1331_v59 }
 0xac6   : > { %v1344_v8 = vmul.f32 %v2478_v5, %v1339_v6 }
 0xac8   : > { %v3214_v9 = vadd.f32 %v2479_v7, %v1344_v8 }
 0xaca   : > { %v1358_v10 = vpack.c.bf16 %v3214_v9, %v3214_v9 }
 0xacc   : > { %2722 = vmatmul.mubr.msk.bf16.vlgmr.msra.gmra.mxu1 %vm417_vm3, %v1358_v10 }
 0xacd   : > { %2727 = vmatprep.mubr.msk.bf16.mxu1 %vm2931_vm1, %v2930_v1 }
 0xb8c   : > { %v1417_v13 = vpop.f32.mrf.mxu1 }
 0xb8d   : > { %v1418_v14 = vadd.f32 %v2484_v11, %v1417_v13 }
 0xb8e   : > { %v2723_v15 = vpop.f32.mrf.mxu1 }
 0xb8f   : > { %1426 = vrot.lane.b32.xlu0 %v1418_v14, %s2933_s28  ;;  %v3226_v20 = vpack.c.bf16 %v1418_v14, %v1418_v14  ;;  %v1423_v21 = vmul.f32 0.35355338, %v1418_v14  ;;  %s3411_s28 = smov 16  }
 0xb90   : > { %v1420_v16 = vpop.f32.mrf.mxu1 }
 0xb91   : > { %v1424_v22 = vpack.c.bf16 %v1423_v21, %v1423_v21 }
 0xb92   : > { %v2724_v17 = vpop.f32.mrf.mxu1 }
 0xc01   : > { %v1427_v19 = vpop.permute.xlu0 %1426 }
 0xc02   : > { %1429 = vxpose.xlu1.b32.start.end [1/1] (short) (narrow) %v1427_v19, 8 }
 0xc20   : > { %1571 = vrot.lane.b32.xlu1 %v1418_v14, %s2935_s11 }
 0xc24   : > { %1522 = vrot.lane.b32.xlu1 %v3226_v20, %s2939_s16 }
 0xc28   : > { %1757 = vrot.lane.b32.xlu1 %v1424_v22, %s2936_s12 }
 0xc7e   : > { %v1445_v23 = vpop.trf.xlu1 }
 0xc7f   : > { %v1461_v12 = vpack.c.bf16 %v1445_v23, %v1445_v23 }
 0xc81   : > { %v1467_v24 = vsel %vm505_vm4, %v1461_v12, 0 }
 0xc82   : > { %2726 = vmatpush3.bf16.msra.mxu1 %v1467_v24 }
 0xc83   : > { %2731 = vmatprep.subr.bf16.mxu1 %v2930_v1 }
 0xc85   : > { %2728 = vmatmul.mubr.msk.bf16.vlgmr.msra.gmra.mxu1 %vm501_vm5, %v1424_v22 }
 0xc86   : > { %2733 = vmatprep.mubr.msk.bf16.mxu1 %vm2931_vm1, %v2930_v1 }
 0xc92   : > { %v1572_v18 = vpop.permute.xlu1 %1571 }
 0xc93   : > { %1574 = vxpose.xlu1.b32.start.end [1/1] (short) (narrow) %v1572_v18, 8 }
 0xc96   : > { %v1523_v25 = vpop.permute.xlu1 %1522 }
 0xc97   : > { %v1528_v26 = vsel %vm505_vm4, %v1523_v25, 0 }
 0xc98   : > { %2732 = vmatpush3.bf16.msra.mxu1 %v1528_v26 }
 0xc99   : > { %2737 = vmatprep.subr.bf16.mxu1 %v2930_v1 }
 0xc9a   : > { %v1758_v40 = vpop.permute.xlu1 %1757 }
 0xd0f   : > { %v1590_v41 = vpop.trf.xlu1 }
 0xd10   : > { %v1606_v42 = vpack.c.bf16 %v1590_v41, %v1590_v41 }
 0xd12   : > { %v1614_v46 = vsel %vm505_vm4, %v1606_v42, 0 }
 0xd45   : > { %v1503_v27 = vpop.f32.mrf.mxu1 }
 0xd46   : > { %v1509_v28 = vsel %vm501_vm5, %v1503_v27, -inf }
 0xd47   : > { %1510 = vmax.xlane.f32.xlu0 %v1509_v28  ;;  %v2729_v29 = vpop.f32.mrf.mxu1 }
 0xd49   : > { %v1506_v30 = vpop.f32.mrf.mxu1 }
 0xd4b   : > { %v2730_v31 = vpop.f32.mrf.mxu1 }
 0xd5d   : > { %1721 = vrot.lane.b32.xlu0 %v1418_v14, %s2932_s27  ;;  %s3410_s27 = smov 8  }
 0xd61   : > { %1870 = vrot.lane.b32.xlu0 %v1418_v14, %s2934_s29 }
 0xdd0   : > { %v1511_v32 = vpop.xlane.xlu0 %1510 }
 0xdd1   : > { %v1512_v33 = vsub.f32 %v1503_v27, %v1511_v32 }
 0xdd3   : > { %v1513_v34 = vmul.f32 1.442695, %v1512_v33 }
 0xdd4   : > { %v1722_v37 = vpop.permute.xlu0 %1721 }
 0xdd5   : > { %2898 = vpow2.f32 %v1513_v34 }
 0xdd8   : > { %v1871_v38 = vpop.permute.xlu0 %1870 }
 0xde2   : > { %v2899_v35 = vpop.eup %2898 }
 0xde3   : > { %v1515_v36 = vsel %vm501_vm5, %v2899_v35, 0.0 }
 0xde4   : > { %1516 = vadd.xlane.f32.xlu0 %v1515_v36 }
 0xdfa   : > { %1608 = vrot.lane.b32.xlu0 %v1424_v22, %s2937_s14 }
 0xdfe   : > { %1906 = vrot.lane.b32.xlu0 %v1424_v22, %s2938_s15  ;;  %s3412_s15 = smov 24  }
 0xe1c   : > { %1724 = vxpose.xlu0.b32.start.end [1/1] (short) (narrow) %v1722_v37, 8 }
 0xe20   : > { %1873 = vxpose.xlu0.b32.start.end [1/1] (short) (narrow) %v1871_v38, 8 }
 0xe6d   : > { %v1517_v39 = vpop.xlane.xlu0 %1516 }
 0xe6e   : > { %2900 = vrcp.f32 %v1517_v39 }
 0xe71   : > { %v1609_v47 = vpop.permute.xlu0 %1608 }
 0xe75   : > { %v1907_v48 = vpop.permute.xlu0 %1906 }
 0xe7b   : > { %v2901_v43 = vpop.eup %2900 }
 0xe7c   : > { %v1519_v44 = vmul.f32 %v2901_v43, %v2899_v35 }
 0xe7e   : > { %v1520_v45 = vpack.c.bf16 %v1519_v44, %v1519_v44 }
 0xe80   : > { %2734 = vmatmul.mubr.msk.bf16.vlgmr.msra.gmra.mxu1 %vm501_vm5, %v1520_v45 }
 0xe81   : > { %2738 = vmatpush3.bf16.msra.mxu1 %v1614_v46  ;;  %2739 = vmatprep.mubr.msk.bf16.mxu1 %vm2931_vm1, %v2930_v1 }
 0xe82   : > { %2749 = vmatprep.subr.bf16.mxu1 %v2930_v1 }
 0xe88   : > { %2740 = vmatmul.mubr.msk.bf16.vlgmr.msra.gmra.mxu1 %vm501_vm5, %v1609_v47 }
 0xe89   : > { %2751 = vmatprep.mubr.msk.bf16.mxu1 %vm2931_vm1, %v2930_v1 }
 0xe98   : > { %v1740_v49 = vpop.trf.xlu0 }
 0xe99   : > { %v1756_v50 = vpack.c.bf16 %v1740_v49, %v1740_v49 }
 0xe9b   : > { %v1763_v51 = vsel %vm505_vm4, %v1756_v50, 0 }
 0xe9c   : > { %2750 = vmatpush3.bf16.msra.mxu1 %v1763_v51  ;;  %v1889_v52 = vpop.trf.xlu0 }
 0xe9d   : > { %v1905_v53 = vpack.c.bf16 %v1889_v52, %v1889_v52  ;;  %2761 = vmatprep.subr.bf16.mxu1 %v2930_v1 }
 0xe9f   : > { %2752 = vmatmul.mubr.msk.bf16.vlgmr.msra.gmra.mxu1 %vm501_vm5, %v1758_v40  ;;  %v1912_v54 = vsel %vm505_vm4, %v1905_v53, 0  ;;  %v2864_v53 = vld [vmem:[%s3402_s6 + $0x18] sm:$0xff]  }
 0xea0   : > { %2762 = vmatpush3.bf16.msra.mxu1 %v1912_v54  ;;  %2763 = vmatprep.mubr.msk.bf16.mxu1 %vm2931_vm1, %v2930_v1  ;;  %v2865_v54 = vld [vmem:[%s3402_s6 + $0x10] sm:$0xff]  }
 0xea1   : > { %2773 = vmatprep.subr.bf16.mxu1 %v2930_v1 }
 0xea7   : > { %2764 = vmatmul.mubr.msk.bf16.vlgmr.msra.gmra.mxu1 %vm501_vm5, %v1907_v48 }
 0xea8   : > { %2777 = vmatprep.mubr.msk.bf16.mxu1 %vm2931_vm1, %v2930_v1  ;;  %2774 = vmatpush3.bf16.msra.mxu1 %v2864_v53 }
 0xea9   : > { %2775 = vmatprep.subr.bf16.mxu1 %v2930_v1 }
 0xeac   : > { %2776 = vmatpush3.bf16.msra.mxu1 %v2865_v54 }
 0xead   : > { %2789 = vmatprep.subr.bf16.mxu1 %v2930_v1 }
 0xf40   : > { %v1564_v55 = vpop.f32.mrf.mxu1 }
 0xf41   : > { %1570 = vst.msk [vmem:[#allocation2] sm:$0xff] %vm501_vm5, %v1564_v55 }
 0xf42   : > { %v2735_v56 = vpop.f32.mrf.mxu1 }
 0xf44   : > { %v1567_v57 = vpop.f32.mrf.mxu1 }
 0xf46   : > { %v2736_v58 = vpop.f32.mrf.mxu1 }
 0xf48   : > { %v1650_v59 = vpop.f32.mrf.mxu1 }
 0xf49   : > { %v1656_v60 = vsel %vm501_vm5, %v1650_v59, -inf }
 0xf4a   : > { %1657 = vmax.xlane.f32.xlu0 %v1656_v60  ;;  %v2741_v61 = vpop.f32.mrf.mxu1 }
 0xf4c   : > { %v1653_v62 = vpop.f32.mrf.mxu1 }
 0xf4e   : > { %v2742_v63 = vpop.f32.mrf.mxu1 }
 0xf5f   : > { %v1799_v0 = vpop.f32.mrf.mxu1 }
 0xf60   : > { %v1805_v2 = vsel %vm501_vm5, %v1799_v0, -inf }
 0xf61   : > { %1806 = vmax.xlane.f32.xlu1 %v1805_v2  ;;  %v2753_v3 = vpop.f32.mrf.mxu1 }
 0xf63   : > { %v1802_v4 = vpop.f32.mrf.mxu1 }
 0xf65   : > { %v2754_v5 = vpop.f32.mrf.mxu1 }
 0xf67   : > { %v1948_v6 = vpop.f32.mrf.mxu1 }
 0xf68   : > { %v1954_v7 = vsel %vm501_vm5, %v1948_v6, -inf }
 0xf69   : > { %1955 = vmax.xlane.f32.xlu0 %v1954_v7  ;;  %v2765_v8 = vpop.f32.mrf.mxu1 }
 0xf6b   : > { %v1951_v10 = vpop.f32.mrf.mxu1 }
 0xf6d   : > { %v2766_v11 = vpop.f32.mrf.mxu1 }
 0xfd3   : > { %v1658_v13 = vpop.xlane.xlu0 %1657 }
 0xfd4   : > { %v1659_v14 = vsub.f32 %v1650_v59, %v1658_v13 }
 0xfd6   : > { %v1660_v15 = vmul.f32 1.442695, %v1659_v14 }
 0xfd8   : > { %2902 = vpow2.f32 %v1660_v15 }
 0xfe5   : > { %v2903_v16 = vpop.eup %2902 }
 0xfe6   : > { %v1662_v17 = vsel %vm501_vm5, %v2903_v16, 0.0 }
 0xfe7   : > { %1663 = vadd.xlane.f32.xlu1 %v1662_v17  ;;  %v2868_v17 = vld [vmem:[%s3404_s8 + $0x78] sm:$0xff]  }
 0xfea   : > { %v1807_v19 = vpop.xlane.xlu1 %1806 }
 0xfeb   : > { %v1808_v21 = vsub.f32 %v1799_v0, %v1807_v19  ;;  %v2500_v0 = vld [vmem:[%s3398_s2 + $0xb] ss:$0 sm:$0xff]  ;;  %v2869_v19 = vld [vmem:[%s3404_s8 + $0x70] sm:$0xff]  }
 0xfed   : > { %v1809_v22 = vmul.f32 1.442695, %v1808_v21  ;;  %v2870_v21 = vld [vmem:[%s3404_s8 + $0x68] sm:$0xff]  }
 0xfef   : > { %2904 = vpow2.f32 %v1809_v22  ;;  %v2871_v22 = vld [vmem:[%s3404_s8 + $0x60] sm:$0xff]  }
 0xff2   : > { %v1956_v24 = vpop.xlane.xlu0 %1955 }
 0xff3   : > { %v1957_v18 = vsub.f32 %v1948_v6, %v1956_v24 }
 0xff5   : > { %v1958_v25 = vmul.f32 1.442695, %v1957_v18 }
 0xff7   : > { %2906 = vpow2.f32 %v1958_v25 }
 0xff8   : > { %1817 = vrot.lane.b32.xlu1 %v3226_v20, %s2941_s18  ;;  %s3413_s18 = sshll.u32 %s3415_s10, 3 }
 0xff9   : > { %s327_s26 = scalar_lea.vmem %s3405_s9, %s3413_s18 }
 0xffc   : > { %v2905_v23 = vpop.eup %2904 }
 0xffd   : > { %v1811_v12 = vsel %vm501_vm5, %v2905_v23, 0.0 }
 0xffe   : > { %1812 = vadd.xlane.f32.xlu0 %v1811_v12  ;;  %v2873_v12 = vld [vmem:[%s3404_s8 + $0x50] sm:$0xff]  }
0x1004   : > { %v2907_v26 = vpop.eup %2906 }
0x1005   : > { %v1960_v27 = vsel %vm501_vm5, %v2907_v26, 0.0 }
0x1014   : > { %1668 = vrot.lane.b32.xlu0 %v3226_v20, %s2940_s17 }
0x101c   : > { %1961 = vadd.xlane.f32.xlu1 %v1960_v27  ;;  %v2504_v27 = vld [vmem:[%s3398_s2 + $0xe] ss:$0 sm:$0xff] }
0x102d   : > { %1966 = vrot.lane.b32.xlu1 %v3226_v20, %s2942_s19 }
0x1070   : > { %v1664_v28 = vpop.xlane.xlu1 %1663 }
0x1071   : > { %2908 = vrcp.f32 %v1664_v28 }
0x1074   : > { %v1818_v34 = vpop.permute.xlu1 %1817 }
0x1075   : > { %v1823_v36 = vsel %vm505_vm4, %v1818_v34, 0  ;;  %v2875_v34 = vld [vmem:[%s3404_s8 + $0x40] sm:$0xff]  }
0x107e   : > { %v2909_v29 = vpop.eup %2908 }
0x107f   : > { %v1666_v31 = vmul.f32 %v2909_v29, %v2903_v16  ;;  %v2866_v16 = vld [vmem:[%s3403_s7 + $0x18] sm:$0xff]   ;;  %v2505_v29 = vld [vmem:[%s3398_s2 + $0xf] ss:$0 sm:$0xff] }
0x1081   : > { %v1667_v35 = vpack.c.bf16 %v1666_v31, %v1666_v31 }
0x1087   : > { %v1813_v30 = vpop.xlane.xlu0 %1812 }
0x1088   : > { %2910 = vrcp.f32 %v1813_v30 }
0x108b   : > { %v1669_v32 = vpop.permute.xlu0 %1668 }
0x108c   : > { %v1674_v33 = vsel %vm505_vm4, %v1669_v32, 0 }
0x108d   : > { %2744 = vmatpush3.bf16.msra.mxu0 %v1674_v33  ;;  %v2874_v33 = vld [vmem:[%s3404_s8 + $0x48] sm:$0xff]  }
0x108e   : > { %2755 = vmatprep.subr.bf16.mxu0 %v2930_v1 }
0x1090   : > { %2746 = vmatmul.mubr.msk.bf16.vlgmr.msra.gmra.mxu0 %vm501_vm5, %v1667_v35  ;;  %v2510_v35 = vld [vmem:[%s3398_s2 + $0xc] ss:$0 sm:$0xff] }
0x1091   : > { %2756 = vmatpush3.bf16.msra.mxu0 %v1823_v36  ;;  %2757 = vmatprep.mubr.msk.bf16.mxu0 %vm2931_vm1, %v2930_v1 }
0x1092   : > { %2767 = vmatprep.subr.bf16.mxu0 %v2930_v1 }
0x1095   : > { %v2911_v20 = vpop.eup %2910 }
0x1096   : > { %v1815_v37 = vmul.f32 %v2911_v20, %v2905_v23  ;;  %v2872_v23 = vld [vmem:[%s3404_s8 + $0x58] sm:$0xff]  }
0x1098   : > { %v1816_v38 = vpack.c.bf16 %v1815_v37, %v1815_v37 }
0x109a   : > { %2758 = vmatmul.mubr.msk.bf16.vlgmr.msra.gmra.mxu0 %vm501_vm5, %v1816_v38 }
0x109b   : > { %2769 = vmatprep.mubr.msk.bf16.mxu0 %vm2931_vm1, %v2930_v1 }
0x10a5   : > { %v1962_v39 = vpop.xlane.xlu1 %1961 }
0x10a6   : > { %2912 = vrcp.f32 %v1962_v39 }
0x10a9   : > { %v1967_v40 = vpop.permute.xlu1 %1966 }
0x10aa   : > { %v1972_v41 = vsel %vm505_vm4, %v1967_v40, 0 }
0x10ab   : > { %2768 = vmatpush3.bf16.msra.mxu0 %v1972_v41 }
0x10ac   : > { %2781 = vmatprep.subr.bf16.mxu0 %v2930_v1 }
0x10b3   : > { %v2913_v42 = vpop.eup %2912 }
0x10b4   : > { %v1964_v43 = vmul.f32 %v2913_v42, %v2907_v26  ;;  %v2530_v42 = vld [vmem:[%s3398_s2 + $0xd] ss:$0 sm:$0xff] }
0x10b6   : > { %v1965_v44 = vpack.c.bf16 %v1964_v43, %v1964_v43 }
0x10b8   : > { %2770 = vmatmul.mubr.msk.bf16.vlgmr.msra.gmra.mxu0 %vm501_vm5, %v1965_v44 }
0x10b9   : > { %2785 = vmatprep.mubr.msk.bf16.mxu0 %vm2931_vm1, %v2930_v1  ;;  %2782 = vmatpush3.bf16.msra.mxu0 %v2866_v16 }
0x10ba   : > { %2783 = vmatprep.subr.bf16.mxu0 %v2930_v1 }
0x1150   : > { %v1710_v45 = vpop.f32.mrf.mxu0 }
0x1151   : > { %1717 = vrot.lane.b32.xlu1 %v1710_v45, %s3410_s27 }
0x1152   : > { %v2747_v46 = vpop.f32.mrf.mxu0 }
0x1154   : > { %v1713_v47 = vpop.f32.mrf.mxu0 }
0x1156   : > { %v2748_v48 = vpop.f32.mrf.mxu0 }
0x115a   : > { %v1859_v49 = vpop.f32.mrf.mxu0 }
0x115b   : > { %1866 = vrot.lane.b32.xlu0 %v1859_v49, %s3411_s28 }
0x115c   : > { %v2759_v50 = vpop.f32.mrf.mxu0 }
0x115e   : > { %v1862_v51 = vpop.f32.mrf.mxu0 }
0x1160   : > { %v2760_v52 = vpop.f32.mrf.mxu0 }
0x1178   : > { %v2008_v55 = vpop.f32.mrf.mxu0 }
0x1179   : > { %2015 = vrot.lane.b32.xlu1 %v2008_v55, %s3412_s15  ;;  %v2876_v55 = vld [vmem:[%s3400_s4 + $0x8] sm:$0xff]  }
0x117a   : > { %v2771_v56 = vpop.f32.mrf.mxu0 }
0x117b   : > { %v2877_v56 = vld [vmem:[%s3400_s4] sm:$0xff]  }
0x117c   : > { %v2011_v57 = vpop.f32.mrf.mxu0 }
0x117e   : > { %v2772_v58 = vpop.f32.mrf.mxu0 }
0x11c3   : > { %v1718_v59 = vpop.permute.xlu1 %1717 }
0x11c4   : > { %1720 = vst.msk [vmem:[#allocation2] sm:$0xff] %vm760_vm6, %v1718_v59 }
0x11cd   : > { %v1867_v60 = vpop.permute.xlu0 %1866 }
0x11ce   : > { %1869 = vst.msk [vmem:[#allocation2] sm:$0xff] %vm910_vm7, %v1867_v60 }
0x11eb   : > { %v2016_v61 = vpop.permute.xlu1 %2015 }
0x11ec   : > { %2018 = vst.msk [vmem:[#allocation2] sm:$0xff] %vm1060_vm8, %v2016_v61  ;;  %v2539_v61 = vld [vmem:[%s3398_s2 + $0x10] ss:$0 sm:$0xff] }
0x11f3   : > { %v2019_v62 = vld [vmem:[#allocation2] sm:$0xff] }
0x11f4   : > { %v2020_v63 = vpack.c.bf16 %v2019_v62, %v2019_v62 }
0x11f6   : > { %2778 = vmatmul.mubr.msk.bf16.vlgmr.msra.gmra.mxu1 %vm417_vm3, %v2020_v63  ;;  %v2540_v63 = vld [vmem:[%s3398_s2 + $0x11] ss:$0 sm:$0xff] }
0x11f7   : > { %2805 = vmatprep.mubr.msk.bf16.mxu1 %vm2931_vm1, %v2930_v1  ;;  %2790 = vmatpush3.bf16.msra.mxu1 %v2868_v17  ;;  %v2380_v17 = vlaneseq }
0x11f8   : > { %2791 = vmatprep.subr.bf16.mxu1 %v2930_v1 }
0x11fb   : > { %2792 = vmatpush3.bf16.msra.mxu1 %v2869_v19  ;;  %v2381_v19 = vshrl.u32 %v2380_v17, 7 }
0x11fc   : > { %2793 = vmatprep.subr.bf16.mxu1 %v2930_v1 }
0x11ff   : > { %2794 = vmatpush3.bf16.msra.mxu1 %v2870_v21  ;;  %v2382_v21 = vsub.s32 0, %v2381_v19 }
0x1200   : > { %2795 = vmatprep.subr.bf16.mxu1 %v2930_v1 }
0x1203   : > { %2796 = vmatpush3.bf16.msra.mxu1 %v2871_v22 }
0x1204   : > { %2797 = vmatprep.subr.bf16.mxu1 %v2930_v1 }
0x1207   : > { %2798 = vmatpush3.bf16.msra.mxu1 %v2872_v23 }
0x1208   : > { %2799 = vmatprep.subr.bf16.mxu1 %v2930_v1 }
0x120b   : > { %2800 = vmatpush3.bf16.msra.mxu1 %v2873_v12 }
0x120c   : > { %2801 = vmatprep.subr.bf16.mxu1 %v2930_v1 }
0x120f   : > { %2802 = vmatpush3.bf16.msra.mxu1 %v2874_v33 }
0x1210   : > { %2803 = vmatprep.subr.bf16.mxu1 %v2930_v1 }
0x1213   : > { %2804 = vmatpush3.bf16.msra.mxu1 %v2875_v34 }
0x12b6   : > { %v2079_v2 = vpop.f32.mrf.mxu1 }
0x12b7   : > { %v2080_v3 = vadd.f32 %v2500_v0, %v2079_v2 }
0x12b8   : > { %v2779_v4 = vpop.f32.mrf.mxu1 }
0x12b9   : > { %v2085_v5 = vadd.f32 %v2080_v3, %v3214_v9  ;;  %v2867_v9 = vld [vmem:[%s3403_s7 + $0x10] sm:$0xff]  }
0x12ba   : > { %v2082_v6 = vpop.f32.mrf.mxu1  ;;  %2784 = vmatpush3.bf16.msra.mxu0 %v2867_v9 }
0x12bb   : > { %v2086_v7 = vsel %vm417_vm3, %v2085_v5, 0.0  ;;  %2809 = vmatprep.subr.bf16.mxu0 %v2930_v1 }
0x12bc   : > { %2087 = vadd.xlane.f32.xlu0 %v2086_v7  ;;  %v2780_v8 = vpop.f32.mrf.mxu1 }
0x1345   : > { %v2088_v10 = vpop.xlane.xlu0 %2087 }
0x1346   : > { %v2089_v11 = vmul.f32 0.03125, %v2088_v10 }
0x1348   : > { %v2090_v13 = vsub.f32 %v2085_v5, %v2089_v11 }
0x134a   : > { %v2091_v14 = vmul.f32 %v2090_v13, %v2090_v13 }
0x134c   : > { %v2092_v15 = vsel %vm417_vm3, %v2091_v14, 0.0 }
0x134d   : > { %2093 = vadd.xlane.f32.xlu1 %v2092_v15 }
0x13d6   : > { %v2094_v24 = vpop.xlane.xlu1 %2093 }
0x13d7   : > { %v2095_v18 = vmul.f32 0.03125, %v2094_v24 }
0x13d9   : > { %v2096_v25 = vadd.f32 1e-05, %v2095_v18 }
0x13db   : > { %2914 = vrsqrt.f32 %v2096_v25 }
0x13e8   : > { %v2915_v26 = vpop.eup %2914 }
0x13e9   : > { %v2098_v28 = vmul.f32 %v2915_v26, %v2090_v13 }
0x13eb   : > { %v2103_v30 = vmul.f32 %v2504_v27, %v2098_v28 }
0x13ed   : > { %v2108_v31 = vadd.f32 %v2505_v29, %v2103_v30 }
0x13ef   : > { %v2109_v32 = vpack.c.bf16 %v2108_v31, %v2108_v31 }
0x13f1   : > { %2786 = vmatmul.mubr.msk.bf16.vlgmr.msra.gmra.mxu0 %vm417_vm3, %v2109_v32 }
0x13f2   : > { %2813 = vmatprep.mubr.msk.bf16.mxu0 %vm2931_vm1, %v2930_v1  ;;  %2810 = vmatpush3.bf16.msra.mxu0 %v2876_v55 }
0x13f3   : > { %2811 = vmatprep.subr.bf16.mxu0 %v2930_v1  ;;  %v330_v1 = vld [vmem:[%s3398_s2 + $0x1] sm:$0x1] }
0x13f6   : > { %2812 = vmatpush3.bf16.msra.mxu0 %v2877_v56 }
0x14b1   : > { %v2168_v36 = vpop.f32.mrf.mxu0 }
0x14b2   : > { %v2169_v20 = vadd.f32 %v2510_v35, %v2168_v36 }
0x14b3   : > { %v2787_v37 = vpop.f32.mrf.mxu0 }
0x14b4   : > { %v2174_v38 = vmax.f32 %v2169_v20, 0.0 }
0x14b5   : > { %v2171_v39 = vpop.f32.mrf.mxu0 }
0x14b6   : > { %v2175_v40 = vpack.c.bf16 %v2174_v38, %v2174_v38 }
0x14b7   : > { %v2788_v41 = vpop.f32.mrf.mxu0 }
0x14b8   : > { %2806 = vmatmul.mubr.bf16.vlgmr.msra.gmra.mxu1 %v2175_v40 }
0x1578   : > { %v2279_v43 = vpop.f32.mrf.mxu1 }
0x1579   : > { %v2280_v44 = vadd.f32 %v2530_v42, %v2279_v43 }
0x157a   : > { %v2807_v45 = vpop.f32.mrf.mxu1 }
0x157b   : > { %v2285_v46 = vadd.f32 %v2280_v44, %v2108_v31 }
0x157c   : > { %v2282_v47 = vpop.f32.mrf.mxu1 }
0x157d   : > { %v2286_v48 = vsel %vm417_vm3, %v2285_v46, 0.0 }
0x157e   : > { %2287 = vadd.xlane.f32.xlu0 %v2286_v48  ;;  %v2808_v49 = vpop.f32.mrf.mxu1 }
0x1607   : > { %v2288_v50 = vpop.xlane.xlu0 %2287 }
0x1608   : > { %v2289_v51 = vmul.f32 0.03125, %v2288_v50 }
0x160a   : > { %v2290_v52 = vsub.f32 %v2285_v46, %v2289_v51 }
0x160c   : > { %v2291_v53 = vmul.f32 %v2290_v52, %v2290_v52 }
0x160e   : > { %v2292_v54 = vsel %vm417_vm3, %v2291_v53, 0.0 }
0x160f   : > { %2293 = vadd.xlane.f32.xlu0 %v2292_v54 }
0x1698   : > { %v2294_v57 = vpop.xlane.xlu0 %2293 }
0x1699   : > { %v2295_v58 = vmul.f32 0.03125, %v2294_v57 }
0x169b   : > { %v2296_v59 = vadd.f32 1e-05, %v2295_v58 }
0x169d   : > { %2916 = vrsqrt.f32 %v2296_v59 }
0x16aa   : > { %v2917_v60 = vpop.eup %2916 }
0x16ab   : > { %v2298_v62 = vmul.f32 %v2917_v60, %v2290_v52 }
0x16ad   : > { %v2303_v0 = vmul.f32 %v2539_v61, %v2298_v62 }
0x16af   : > { %v2308_v2 = vadd.f32 %v2540_v63, %v2303_v0 }
0x16b1   : > { %v2309_v3 = vpack.c.bf16 %v2308_v2, %v2308_v2 }
0x16b3   : > { %2814 = vmatmul.mubr.msk.bf16.vlgmr.msra.gmra.mxu0 %vm417_vm3, %v2309_v3 }
0x1773   : > { %v2363_v4 = vpop.f32.mrf.mxu0 }
0x1774   : > { %v2364_v5 = vadd.f32 %v2363_v4, %v330_v1 }
0x1775   : > { %v2815_v6 = vpop.f32.mrf.mxu0 }
0x1776   : > { %v2369_v7 = vsel %vm342_vm0, %v2364_v5, -inf }
0x1777   : > { %2370 = vmax.xlane.f32.xlu0 %v2369_v7  ;;  %v2366_v8 = vpop.f32.mrf.mxu0 }
0x1779   : > { %v2816_v10 = vpop.f32.mrf.mxu0 }
0x1800   : > { %v2371_v11 = vpop.xlane.xlu0 %2370 }
0x1801   : > { %v2372_v13 = vsub.f32 %v2364_v5, %v2371_v11 }
0x1803   : > { %v2373_v14 = vmul.f32 1.442695, %v2372_v13 }
0x1805   : > { %2918 = vpow2.f32 %v2373_v14 }
0x1812   : > { %v2919_v15 = vpop.eup %2918 }
0x1813   : > { %v2375_v16 = vsel %vm342_vm0, %v2919_v15, 0.0 }
0x1814   : > { %2376 = vadd.xlane.f32.xlu1 %v2375_v16 }
0x189d   : > { %v2377_v9 = vpop.xlane.xlu1 %2376 }
0x189e   : > { %2920 = vrcp.f32 %v2377_v9 }
0x18ab   : > { %v2921_v22 = vpop.eup %2920 }
0x18ac   : > { %v2379_v23 = vmul.f32 %v2921_v22, %v2919_v15 }
0x18ae   : > { %v2383_v12 = vrot.slane %v2379_v23, %v2382_v21 }
0x18b0   : > { %2384 = vst [vmem:[%s327_s26] sm:$0xff] %v2383_v12 }
0x18b1 PF: > { %s19_s30 = sadd.s32 1, %s2928_s30  }
0x18b2   : > { %p16_p4 = scmp.ge.s32.totalorder %s19_s30, 4  }
0x18b4   :  { %18 = sbr.rel (!%p16_p4) target bundleno = 1 (0x1), region = 90 }

</bundles_post_ra>
